<compile_context>
chip_gen: v7x
topology: tpu7x:2x2x1
jax: 0.10.0
libtpu: 0.0.40
codegen_flags: <defaults>
</compile_context>

<pallas_src>
import functools

import jax
import jax.numpy as jnp
from jax.experimental import pallas as pl
from jax.experimental.pallas import tpu as pltpu


def _round_up(x, m):
    return (x + m - 1) // m * m


def _geometry(H, W, K):
    """Shared flat-layout geometry for the conv / pool / FC coupling.

    Conv output pixel (h, w) lives at flat column q = h*Wp + w of the (F, L)
    pooled slab; columns NOT of that form (right halo, row gaps, tail) hold
    garbage conv values and are neutralized ONLY because the scattered FC
    weight leaves those rows zero.  Change one side => change the other.
    """
    pad = K // 2
    Hp, Wp = H + 2 * pad, W + 2 * pad
    L = _round_up((H - 1) * Wp + W, 128)            # lane-dense pooled width
    need = L + (K - 1) * Wp + (K - 1)               # furthest shifted read
    extra = max(0, -(-(need - Hp * Wp) // Wp))      # extra zero rows (bottom)
    L_in = (Hp + extra) * Wp
    assert L >= (H - 1) * Wp + W                    # every valid pixel fits
    assert L_in >= need                             # every shifted read fits
    return pad, Wp, L, extra, L_in


# ----------------------------------------------------------------------------
# One-time weight preparation (hoisted out of the per-forward path)
# ----------------------------------------------------------------------------
def prepare_params(params, *, h, w):
    conv_w, conv_b, fc_w, fc_b = params
    F, C, KH, KW = conv_w.shape
    assert KH == KW
    NC = fc_b.shape[0]
    _, Wp, L, _, _ = _geometry(h, w, KH)
    C_pad = _round_up(C, 8)                         # sublane-aligned taps
    NC_pad = _round_up(NC, 128)                     # lane-dense classifier out

    # conv weight -> (F, K*K*C_pad), columns ordered (kh, kw, c); bias (F, 1)
    w4 = jnp.zeros((F, C_pad, KH, KW), jnp.float32).at[:, :C].set(conv_w)
    w_mat = w4.transpose(0, 2, 3, 1).reshape(F, KH * KW * C_pad)
    b_mat = conv_b.reshape(F, 1).astype(jnp.float32)

    # FC weight scattered to the pooled layout: row (f, q=h*Wp+w) <- fc_w row
    # f*H*W + h*W + w.  Rows at garbage pooled columns stay ZERO (correctness
    # hinges on this -- see _geometry docstring).  Classes padded to 128.
    sp = (jnp.arange(h)[:, None] * Wp + jnp.arange(w)[None, :]).reshape(-1)
    fcw = jnp.zeros((F, L, NC_pad), jnp.float32)
    fcw = fcw.at[:, sp, :NC].set(
        fc_w.reshape(F, h * w, NC).astype(jnp.float32))
    fcb = jnp.zeros((1, NC_pad), jnp.float32).at[0, :NC].set(
        fc_b.astype(jnp.float32))
    return w_mat, b_mat, fcw, fcb


# ----------------------------------------------------------------------------
# Fused kernel: conv + bias + ReLU + max-over-views + linear classifier
# ----------------------------------------------------------------------------
def _fused_mvcnn_call(xf, w_mat, b_mat, fcw, fcb, *, K, Wp, L):
    B, V, C_pad, L_in = xf.shape
    F, KKC = w_mat.shape
    assert KKC == K * K * C_pad
    NC_pad = fcw.shape[-1]

    def kernel(x_ref, w_ref, b_ref, fcw_ref, fcb_ref, o_ref):
        w = w_ref[...]                                      # (F, K*K*C_pad)
        bias = b_ref[...]                                   # (F, 1)

        def view_features(v):                               # v is static
            # stacked 3x3 taps: 9 lane-shifted (C_pad, L) slices -> one
            # (K*K*C_pad, L) slab -> a single MXU matmul per view.
            slab = jnp.concatenate(
                [x_ref[v, :, kh * Wp + kw:kh * Wp + kw + L]
                 for kh in range(K) for kw in range(K)], axis=0)
            y = jnp.dot(w, slab, preferred_element_type=jnp.float32)
            return jnp.maximum(y + bias, 0.0)               # bias + ReLU

        # running max over views, held in vregs (F x L f32 = 3 vregs here).
        pooled = view_features(0)
        for v in range(1, V):                               # static unroll
            pooled = jnp.maximum(pooled, view_features(v))

        # Fused classifier epilogue: out = flatten(pooled) @ fc_w + fc_b,
        # expressed as F row-slab matmuls to avoid an in-kernel
        # (F, L) -> (1, F*L) relayout.  Garbage pooled columns multiply the
        # all-zero FC rows left by prepare_params().
        out = fcb_ref[...]                                  # (1, NC_pad)
        for f in range(F):
            out = out + jnp.dot(pooled[f:f + 1, :], fcw_ref[f],
                                preferred_element_type=jnp.float32)
        o_ref[...] = out

    out3 = pl.pallas_call(
        kernel,
        out_shape=jax.ShapeDtypeStruct((B, 1, NC_pad), jnp.float32),
        grid_spec=pltpu.PrefetchScalarGridSpec(
            num_scalar_prefetch=0,
            grid=(B,),                     # >= 2 parallel blocks (v7x 2 TCs)
            in_specs=[
                pl.BlockSpec((None, V, C_pad, L_in), lambda b: (b, 0, 0, 0)),
                pl.BlockSpec((F, KKC), lambda b: (0, 0)),
                pl.BlockSpec((F, 1), lambda b: (0, 0)),
                # TODO(synk): at backbone scale (F~512, 7x7, 1000 classes) the
                # FC weight must be K/N-tiled over a grid reduction axis (or
                # cast to bf16) to respect v7x's 64 MiB VMEM; at this size it
                # is 1.5 MB and weight-resident.
                pl.BlockSpec((F, L, NC_pad), lambda b: (0, 0, 0)),
                pl.BlockSpec((1, NC_pad), lambda b: (0, 0)),
            ],
            out_specs=pl.BlockSpec((None, 1, NC_pad), lambda b: (b, 0, 0)),
        ),
        compiler_params=pltpu.CompilerParams(
            dimension_semantics=("parallel",),
            vmem_limit_bytes=32 * 1024 * 1024),
    )(xf, w_mat, b_mat, fcw, fcb)
    return out3.reshape(B, NC_pad)


# ----------------------------------------------------------------------------
# MVCNN forward
# ----------------------------------------------------------------------------
@functools.partial(jax.jit, static_argnames=("num_views", "nclasses"))
def mvcnn_forward(x, prepared, *, num_views, nclasses):
    # x: (B*V, C, H, W) NCHW, like the PyTorch module.
    w_mat, b_mat, fcw, fcb = prepared
    NV, C, H, W = x.shape
    B = NV // num_views
    C_pad = _round_up(C, 8)
    F, KKC = w_mat.shape
    K = int(round((KKC // C_pad) ** 0.5))
    pad, Wp, L, extra, L_in = _geometry(H, W, K)

    # SINGLE jnp.pad per forward: conv halo + channel pad to 8 sublanes +
    # extra zero rows at the bottom so the flattened per-view slab covers the
    # furthest shifted read.  The reshapes below are metadata-only.
    xp = jnp.pad(x, ((0, 0), (0, C_pad - C), (pad, pad + extra), (pad, pad)))
    xf = xp.reshape(B, num_views, C_pad, L_in)

    out = _fused_mvcnn_call(xf, w_mat, b_mat, fcw, fcb, K=K, Wp=Wp, L=L)
    return out[:, :nclasses]


def init_params(key, c_in, feat, h, w, nclasses):
    k1, k2, k3, k4 = jax.random.split(key, 4)
    conv_w = jax.random.normal(k1, (feat, c_in, 3, 3), jnp.float32) * 0.1
    conv_b = jax.random.normal(k2, (feat,), jnp.float32) * 0.1
    fc_w = jax.random.normal(k3, (feat * h * w, nclasses), jnp.float32) * 0.02
    fc_b = jax.random.normal(k4, (nclasses,), jnp.float32) * 0.02
    return conv_w, conv_b, fc_w, fc_b


if __name__ == "__main__":
    # small shapes: batch=2 objects, num_views=4, C=3, 16x16 images, F=8 feats
    B, V, C, H, W = 2, 4, 3, 16, 16
    FEAT, NCLASSES = 8, 12

    key = jax.random.PRNGKey(0)
    kx, kp = jax.random.split(key)
    x = jax.random.normal(kx, (B * V, C, H, W), jnp.float32)
    params = init_params(kp, C, FEAT, H, W, NCLASSES)

    prepared = prepare_params(params, h=H, w=W)   # one-time weight prep
    out = mvcnn_forward(x, prepared, num_views=V, nclasses=NCLASSES)
    jax.block_until_ready(out)
    assert out.shape == (B, NCLASSES) and out.dtype == jnp.float32

    # correctness cross-check against pure-JAX reference
    def ref_forward(x, params):
        conv_w, conv_b, fc_w, fc_b = params
        y = jax.lax.conv_general_dilated(
            x, conv_w, (1, 1), "SAME",
            dimension_numbers=("NCHW", "OIHW", "NCHW"))
        y = jnp.maximum(y + conv_b[None, :, None, None], 0.0)
        y = y.reshape(B, V, -1)
        return jnp.max(y, axis=1) @ fc_w + fc_b

    ref = ref_forward(x, params)
    assert jnp.allclose(out, ref, atol=1e-3, rtol=1e-3), (
        float(jnp.max(jnp.abs(out - ref))))

    print("KERNEL_OK")
</pallas_src>

<mosaic_0001>
module attributes {stable_mosaic.version = 11 : i64} {
  func.func @kernel(%arg0: i32, %arg1: memref<1x4x8x432xf32, #tpu.memory_space<vmem>>, %arg2: memref<8x72xf32, #tpu.memory_space<vmem>>, %arg3: memref<8x1xf32, #tpu.memory_space<vmem>>, %arg4: memref<8x384x128xf32, #tpu.memory_space<vmem>>, %arg5: memref<1x128xf32, #tpu.memory_space<vmem>>, %arg6: memref<1x1x128xf32, #tpu.memory_space<vmem>>) attributes {dimension_semantics = [#tpu.dimension_semantics<parallel>], iteration_bounds = array<i64: 2>, scalar_prefetch = 0 : i64, scratch_operands = 0 : i64, tpu.core_type = #tpu.core_type<tc>, window_params = [{transform_indices = @transform_0, window_bounds = array<i64: 1, 4, 8, 432>}, {pipeline_mode = #tpu.pipeline_mode<synchronous>, transform_indices = @transform_1, window_bounds = array<i64: 8, 72>}, {pipeline_mode = #tpu.pipeline_mode<synchronous>, transform_indices = @transform_2, window_bounds = array<i64: 8, 1>}, {pipeline_mode = #tpu.pipeline_mode<synchronous>, transform_indices = @transform_3, window_bounds = array<i64: 8, 384, 128>}, {pipeline_mode = #tpu.pipeline_mode<synchronous>, transform_indices = @transform_4, window_bounds = array<i64: 1, 128>}, {transform_indices = @transform_5, window_bounds = array<i64: 1, 1, 128>}]} {
    %c0 = arith.constant 0 : index
    %c0_0 = arith.constant 0 : index
    %0 = vector.load %arg2[%c0, %c0_0] : memref<8x72xf32, #tpu.memory_space<vmem>>, vector<8x72xf32>
    %c0_1 = arith.constant 0 : index
    %c0_2 = arith.constant 0 : index
    %1 = vector.load %arg3[%c0_1, %c0_2] : memref<8x1xf32, #tpu.memory_space<vmem>>, vector<8x1xf32>
    %c0_3 = arith.constant 0 : index
    %c0_4 = arith.constant 0 : index
    %c0_5 = arith.constant 0 : index
    %c0_6 = arith.constant 0 : index
    %2 = vector.load %arg1[%c0_3, %c0_4, %c0_5, %c0_6] : memref<1x4x8x432xf32, #tpu.memory_space<vmem>>, vector<1x1x8x384xf32>
    %3 = vector.shape_cast %2 : vector<1x1x8x384xf32> to vector<8x384xf32>
    %c0_7 = arith.constant 0 : index
    %c0_8 = arith.constant 0 : index
    %c0_9 = arith.constant 0 : index
    %c1 = arith.constant 1 : index
    %4 = vector.load %arg1[%c0_7, %c0_8, %c0_9, %c1] : memref<1x4x8x432xf32, #tpu.memory_space<vmem>>, vector<1x1x8x384xf32>
    %5 = vector.shape_cast %4 : vector<1x1x8x384xf32> to vector<8x384xf32>
    %c0_10 = arith.constant 0 : index
    %c0_11 = arith.constant 0 : index
    %c0_12 = arith.constant 0 : index
    %c2 = arith.constant 2 : index
    %6 = vector.load %arg1[%c0_10, %c0_11, %c0_12, %c2] : memref<1x4x8x432xf32, #tpu.memory_space<vmem>>, vector<1x1x8x384xf32>
    %7 = vector.shape_cast %6 : vector<1x1x8x384xf32> to vector<8x384xf32>
    %c0_13 = arith.constant 0 : index
    %c0_14 = arith.constant 0 : index
    %c0_15 = arith.constant 0 : index
    %c18 = arith.constant 18 : index
    %8 = vector.load %arg1[%c0_13, %c0_14, %c0_15, %c18] : memref<1x4x8x432xf32, #tpu.memory_space<vmem>>, vector<1x1x8x384xf32>
    %9 = vector.shape_cast %8 : vector<1x1x8x384xf32> to vector<8x384xf32>
    %c0_16 = arith.constant 0 : index
    %c0_17 = arith.constant 0 : index
    %c0_18 = arith.constant 0 : index
    %c19 = arith.constant 19 : index
    %10 = vector.load %arg1[%c0_16, %c0_17, %c0_18, %c19] : memref<1x4x8x432xf32, #tpu.memory_space<vmem>>, vector<1x1x8x384xf32>
    %11 = vector.shape_cast %10 : vector<1x1x8x384xf32> to vector<8x384xf32>
    %c0_19 = arith.constant 0 : index
    %c0_20 = arith.constant 0 : index
    %c0_21 = arith.constant 0 : index
    %c20 = arith.constant 20 : index
    %12 = vector.load %arg1[%c0_19, %c0_20, %c0_21, %c20] : memref<1x4x8x432xf32, #tpu.memory_space<vmem>>, vector<1x1x8x384xf32>
    %13 = vector.shape_cast %12 : vector<1x1x8x384xf32> to vector<8x384xf32>
    %c0_22 = arith.constant 0 : index
    %c0_23 = arith.constant 0 : index
    %c0_24 = arith.constant 0 : index
    %c36 = arith.constant 36 : index
    %14 = vector.load %arg1[%c0_22, %c0_23, %c0_24, %c36] : memref<1x4x8x432xf32, #tpu.memory_space<vmem>>, vector<1x1x8x384xf32>
    %15 = vector.shape_cast %14 : vector<1x1x8x384xf32> to vector<8x384xf32>
    %c0_25 = arith.constant 0 : index
    %c0_26 = arith.constant 0 : index
    %c0_27 = arith.constant 0 : index
    %c37 = arith.constant 37 : index
    %16 = vector.load %arg1[%c0_25, %c0_26, %c0_27, %c37] : memref<1x4x8x432xf32, #tpu.memory_space<vmem>>, vector<1x1x8x384xf32>
    %17 = vector.shape_cast %16 : vector<1x1x8x384xf32> to vector<8x384xf32>
    %c0_28 = arith.constant 0 : index
    %c0_29 = arith.constant 0 : index
    %c0_30 = arith.constant 0 : index
    %c38 = arith.constant 38 : index
    %18 = vector.load %arg1[%c0_28, %c0_29, %c0_30, %c38] : memref<1x4x8x432xf32, #tpu.memory_space<vmem>>, vector<1x1x8x384xf32>
    %19 = vector.shape_cast %18 : vector<1x1x8x384xf32> to vector<8x384xf32>
    %20 = tpu.concatenate %3, %5, %7, %9, %11, %13, %15, %17, %19 in 0 : vector<8x384xf32>, vector<8x384xf32>, vector<8x384xf32>, vector<8x384xf32>, vector<8x384xf32>, vector<8x384xf32>, vector<8x384xf32>, vector<8x384xf32>, vector<8x384xf32> -> vector<72x384xf32>
    %cst = arith.constant dense<0.000000e+00> : vector<8x384xf32>
    %21 = tpu.matmul %0, %20, %cst {dimension_numbers = #tpu.dot_dimension_numbers<[1], [0], [0], [1], [0, 0, 1, 1], [], []>} : vector<8x72xf32>, vector<72x384xf32>, vector<8x384xf32> -> vector<8x384xf32>
    %22 = vector.broadcast %1 : vector<8x1xf32> to vector<8x384xf32>
    %23 = arith.addf %21, %22 : vector<8x384xf32>
    %cst_31 = arith.constant 0.000000e+00 : f32
    %24 = vector.broadcast %cst_31 : f32 to vector<8x384xf32>
    %25 = arith.maximumf %23, %24 : vector<8x384xf32>
    %c0_32 = arith.constant 0 : index
    %c1_33 = arith.constant 1 : index
    %c0_34 = arith.constant 0 : index
    %c0_35 = arith.constant 0 : index
    %26 = vector.load %arg1[%c0_32, %c1_33, %c0_34, %c0_35] : memref<1x4x8x432xf32, #tpu.memory_space<vmem>>, vector<1x1x8x384xf32>
    %27 = vector.shape_cast %26 : vector<1x1x8x384xf32> to vector<8x384xf32>
    %c0_36 = arith.constant 0 : index
    %c1_37 = arith.constant 1 : index
    %c0_38 = arith.constant 0 : index
    %c1_39 = arith.constant 1 : index
    %28 = vector.load %arg1[%c0_36, %c1_37, %c0_38, %c1_39] : memref<1x4x8x432xf32, #tpu.memory_space<vmem>>, vector<1x1x8x384xf32>
    %29 = vector.shape_cast %28 : vector<1x1x8x384xf32> to vector<8x384xf32>
    %c0_40 = arith.constant 0 : index
    %c1_41 = arith.constant 1 : index
    %c0_42 = arith.constant 0 : index
    %c2_43 = arith.constant 2 : index
    %30 = vector.load %arg1[%c0_40, %c1_41, %c0_42, %c2_43] : memref<1x4x8x432xf32, #tpu.memory_space<vmem>>, vector<1x1x8x384xf32>
    %31 = vector.shape_cast %30 : vector<1x1x8x384xf32> to vector<8x384xf32>
    %c0_44 = arith.constant 0 : index
    %c1_45 = arith.constant 1 : index
    %c0_46 = arith.constant 0 : index
    %c18_47 = arith.constant 18 : index
    %32 = vector.load %arg1[%c0_44, %c1_45, %c0_46, %c18_47] : memref<1x4x8x432xf32, #tpu.memory_space<vmem>>, vector<1x1x8x384xf32>
    %33 = vector.shape_cast %32 : vector<1x1x8x384xf32> to vector<8x384xf32>
    %c0_48 = arith.constant 0 : index
    %c1_49 = arith.constant 1 : index
    %c0_50 = arith.constant 0 : index
    %c19_51 = arith.constant 19 : index
    %34 = vector.load %arg1[%c0_48, %c1_49, %c0_50, %c19_51] : memref<1x4x8x432xf32, #tpu.memory_space<vmem>>, vector<1x1x8x384xf32>
    %35 = vector.shape_cast %34 : vector<1x1x8x384xf32> to vector<8x384xf32>
    %c0_52 = arith.constant 0 : index
    %c1_53 = arith.constant 1 : index
    %c0_54 = arith.constant 0 : index
    %c20_55 = arith.constant 20 : index
    %36 = vector.load %arg1[%c0_52, %c1_53, %c0_54, %c20_55] : memref<1x4x8x432xf32, #tpu.memory_space<vmem>>, vector<1x1x8x384xf32>
    %37 = vector.shape_cast %36 : vector<1x1x8x384xf32> to vector<8x384xf32>
    %c0_56 = arith.constant 0 : index
    %c1_57 = arith.constant 1 : index
    %c0_58 = arith.constant 0 : index
    %c36_59 = arith.constant 36 : index
    %38 = vector.load %arg1[%c0_56, %c1_57, %c0_58, %c36_59] : memref<1x4x8x432xf32, #tpu.memory_space<vmem>>, vector<1x1x8x384xf32>
    %39 = vector.shape_cast %38 : vector<1x1x8x384xf32> to vector<8x384xf32>
    %c0_60 = arith.constant 0 : index
    %c1_61 = arith.constant 1 : index
    %c0_62 = arith.constant 0 : index
    %c37_63 = arith.constant 37 : index
    %40 = vector.load %arg1[%c0_60, %c1_61, %c0_62, %c37_63] : memref<1x4x8x432xf32, #tpu.memory_space<vmem>>, vector<1x1x8x384xf32>
    %41 = vector.shape_cast %40 : vector<1x1x8x384xf32> to vector<8x384xf32>
    %c0_64 = arith.constant 0 : index
    %c1_65 = arith.constant 1 : index
    %c0_66 = arith.constant 0 : index
    %c38_67 = arith.constant 38 : index
    %42 = vector.load %arg1[%c0_64, %c1_65, %c0_66, %c38_67] : memref<1x4x8x432xf32, #tpu.memory_space<vmem>>, vector<1x1x8x384xf32>
    %43 = vector.shape_cast %42 : vector<1x1x8x384xf32> to vector<8x384xf32>
    %44 = tpu.concatenate %27, %29, %31, %33, %35, %37, %39, %41, %43 in 0 : vector<8x384xf32>, vector<8x384xf32>, vector<8x384xf32>, vector<8x384xf32>, vector<8x384xf32>, vector<8x384xf32>, vector<8x384xf32>, vector<8x384xf32>, vector<8x384xf32> -> vector<72x384xf32>
    %cst_68 = arith.constant dense<0.000000e+00> : vector<8x384xf32>
    %45 = tpu.matmul %0, %44, %cst_68 {dimension_numbers = #tpu.dot_dimension_numbers<[1], [0], [0], [1], [0, 0, 1, 1], [], []>} : vector<8x72xf32>, vector<72x384xf32>, vector<8x384xf32> -> vector<8x384xf32>
    %46 = vector.broadcast %1 : vector<8x1xf32> to vector<8x384xf32>
    %47 = arith.addf %45, %46 : vector<8x384xf32>
    %cst_69 = arith.constant 0.000000e+00 : f32
    %48 = vector.broadcast %cst_69 : f32 to vector<8x384xf32>
    %49 = arith.maximumf %47, %48 : vector<8x384xf32>
    %50 = arith.maximumf %25, %49 : vector<8x384xf32>
    %c0_70 = arith.constant 0 : index
    %c2_71 = arith.constant 2 : index
    %c0_72 = arith.constant 0 : index
    %c0_73 = arith.constant 0 : index
    %51 = vector.load %arg1[%c0_70, %c2_71, %c0_72, %c0_73] : memref<1x4x8x432xf32, #tpu.memory_space<vmem>>, vector<1x1x8x384xf32>
    %52 = vector.shape_cast %51 : vector<1x1x8x384xf32> to vector<8x384xf32>
    %c0_74 = arith.constant 0 : index
    %c2_75 = arith.constant 2 : index
    %c0_76 = arith.constant 0 : index
    %c1_77 = arith.constant 1 : index
    %53 = vector.load %arg1[%c0_74, %c2_75, %c0_76, %c1_77] : memref<1x4x8x432xf32, #tpu.memory_space<vmem>>, vector<1x1x8x384xf32>
    %54 = vector.shape_cast %53 : vector<1x1x8x384xf32> to vector<8x384xf32>
    %c0_78 = arith.constant 0 : index
    %c2_79 = arith.constant 2 : index
    %c0_80 = arith.constant 0 : index
    %c2_81 = arith.constant 2 : index
    %55 = vector.load %arg1[%c0_78, %c2_79, %c0_80, %c2_81] : memref<1x4x8x432xf32, #tpu.memory_space<vmem>>, vector<1x1x8x384xf32>
    %56 = vector.shape_cast %55 : vector<1x1x8x384xf32> to vector<8x384xf32>
    %c0_82 = arith.constant 0 : index
    %c2_83 = arith.constant 2 : index
    %c0_84 = arith.constant 0 : index
    %c18_85 = arith.constant 18 : index
    %57 = vector.load %arg1[%c0_82, %c2_83, %c0_84, %c18_85] : memref<1x4x8x432xf32, #tpu.memory_space<vmem>>, vector<1x1x8x384xf32>
    %58 = vector.shape_cast %57 : vector<1x1x8x384xf32> to vector<8x384xf32>
    %c0_86 = arith.constant 0 : index
    %c2_87 = arith.constant 2 : index
    %c0_88 = arith.constant 0 : index
    %c19_89 = arith.constant 19 : index
    %59 = vector.load %arg1[%c0_86, %c2_87, %c0_88, %c19_89] : memref<1x4x8x432xf32, #tpu.memory_space<vmem>>, vector<1x1x8x384xf32>
    %60 = vector.shape_cast %59 : vector<1x1x8x384xf32> to vector<8x384xf32>
    %c0_90 = arith.constant 0 : index
    %c2_91 = arith.constant 2 : index
    %c0_92 = arith.constant 0 : index
    %c20_93 = arith.constant 20 : index
    %61 = vector.load %arg1[%c0_90, %c2_91, %c0_92, %c20_93] : memref<1x4x8x432xf32, #tpu.memory_space<vmem>>, vector<1x1x8x384xf32>
    %62 = vector.shape_cast %61 : vector<1x1x8x384xf32> to vector<8x384xf32>
    %c0_94 = arith.constant 0 : index
    %c2_95 = arith.constant 2 : index
    %c0_96 = arith.constant 0 : index
    %c36_97 = arith.constant 36 : index
    %63 = vector.load %arg1[%c0_94, %c2_95, %c0_96, %c36_97] : memref<1x4x8x432xf32, #tpu.memory_space<vmem>>, vector<1x1x8x384xf32>
    %64 = vector.shape_cast %63 : vector<1x1x8x384xf32> to vector<8x384xf32>
    %c0_98 = arith.constant 0 : index
    %c2_99 = arith.constant 2 : index
    %c0_100 = arith.constant 0 : index
    %c37_101 = arith.constant 37 : index
    %65 = vector.load %arg1[%c0_98, %c2_99, %c0_100, %c37_101] : memref<1x4x8x432xf32, #tpu.memory_space<vmem>>, vector<1x1x8x384xf32>
    %66 = vector.shape_cast %65 : vector<1x1x8x384xf32> to vector<8x384xf32>
    %c0_102 = arith.constant 0 : index
    %c2_103 = arith.constant 2 : index
    %c0_104 = arith.constant 0 : index
    %c38_105 = arith.constant 38 : index
    %67 = vector.load %arg1[%c0_102, %c2_103, %c0_104, %c38_105] : memref<1x4x8x432xf32, #tpu.memory_space<vmem>>, vector<1x1x8x384xf32>
    %68 = vector.shape_cast %67 : vector<1x1x8x384xf32> to vector<8x384xf32>
    %69 = tpu.concatenate %52, %54, %56, %58, %60, %62, %64, %66, %68 in 0 : vector<8x384xf32>, vector<8x384xf32>, vector<8x384xf32>, vector<8x384xf32>, vector<8x384xf32>, vector<8x384xf32>, vector<8x384xf32>, vector<8x384xf32>, vector<8x384xf32> -> vector<72x384xf32>
    %cst_106 = arith.constant dense<0.000000e+00> : vector<8x384xf32>
    %70 = tpu.matmul %0, %69, %cst_106 {dimension_numbers = #tpu.dot_dimension_numbers<[1], [0], [0], [1], [0, 0, 1, 1], [], []>} : vector<8x72xf32>, vector<72x384xf32>, vector<8x384xf32> -> vector<8x384xf32>
    %71 = vector.broadcast %1 : vector<8x1xf32> to vector<8x384xf32>
    %72 = arith.addf %70, %71 : vector<8x384xf32>
    %cst_107 = arith.constant 0.000000e+00 : f32
    %73 = vector.broadcast %cst_107 : f32 to vector<8x384xf32>
    %74 = arith.maximumf %72, %73 : vector<8x384xf32>
    %75 = arith.maximumf %50, %74 : vector<8x384xf32>
    %c0_108 = arith.constant 0 : index
    %c3 = arith.constant 3 : index
    %c0_109 = arith.constant 0 : index
    %c0_110 = arith.constant 0 : index
    %76 = vector.load %arg1[%c0_108, %c3, %c0_109, %c0_110] : memref<1x4x8x432xf32, #tpu.memory_space<vmem>>, vector<1x1x8x384xf32>
    %77 = vector.shape_cast %76 : vector<1x1x8x384xf32> to vector<8x384xf32>
    %c0_111 = arith.constant 0 : index
    %c3_112 = arith.constant 3 : index
    %c0_113 = arith.constant 0 : index
    %c1_114 = arith.constant 1 : index
    %78 = vector.load %arg1[%c0_111, %c3_112, %c0_113, %c1_114] : memref<1x4x8x432xf32, #tpu.memory_space<vmem>>, vector<1x1x8x384xf32>
    %79 = vector.shape_cast %78 : vector<1x1x8x384xf32> to vector<8x384xf32>
    %c0_115 = arith.constant 0 : index
    %c3_116 = arith.constant 3 : index
    %c0_117 = arith.constant 0 : index
    %c2_118 = arith.constant 2 : index
    %80 = vector.load %arg1[%c0_115, %c3_116, %c0_117, %c2_118] : memref<1x4x8x432xf32, #tpu.memory_space<vmem>>, vector<1x1x8x384xf32>
    %81 = vector.shape_cast %80 : vector<1x1x8x384xf32> to vector<8x384xf32>
    %c0_119 = arith.constant 0 : index
    %c3_120 = arith.constant 3 : index
    %c0_121 = arith.constant 0 : index
    %c18_122 = arith.constant 18 : index
    %82 = vector.load %arg1[%c0_119, %c3_120, %c0_121, %c18_122] : memref<1x4x8x432xf32, #tpu.memory_space<vmem>>, vector<1x1x8x384xf32>
    %83 = vector.shape_cast %82 : vector<1x1x8x384xf32> to vector<8x384xf32>
    %c0_123 = arith.constant 0 : index
    %c3_124 = arith.constant 3 : index
    %c0_125 = arith.constant 0 : index
    %c19_126 = arith.constant 19 : index
    %84 = vector.load %arg1[%c0_123, %c3_124, %c0_125, %c19_126] : memref<1x4x8x432xf32, #tpu.memory_space<vmem>>, vector<1x1x8x384xf32>
    %85 = vector.shape_cast %84 : vector<1x1x8x384xf32> to vector<8x384xf32>
    %c0_127 = arith.constant 0 : index
    %c3_128 = arith.constant 3 : index
    %c0_129 = arith.constant 0 : index
    %c20_130 = arith.constant 20 : index
    %86 = vector.load %arg1[%c0_127, %c3_128, %c0_129, %c20_130] : memref<1x4x8x432xf32, #tpu.memory_space<vmem>>, vector<1x1x8x384xf32>
    %87 = vector.shape_cast %86 : vector<1x1x8x384xf32> to vector<8x384xf32>
    %c0_131 = arith.constant 0 : index
    %c3_132 = arith.constant 3 : index
    %c0_133 = arith.constant 0 : index
    %c36_134 = arith.constant 36 : index
    %88 = vector.load %arg1[%c0_131, %c3_132, %c0_133, %c36_134] : memref<1x4x8x432xf32, #tpu.memory_space<vmem>>, vector<1x1x8x384xf32>
    %89 = vector.shape_cast %88 : vector<1x1x8x384xf32> to vector<8x384xf32>
    %c0_135 = arith.constant 0 : index
    %c3_136 = arith.constant 3 : index
    %c0_137 = arith.constant 0 : index
    %c37_138 = arith.constant 37 : index
    %90 = vector.load %arg1[%c0_135, %c3_136, %c0_137, %c37_138] : memref<1x4x8x432xf32, #tpu.memory_space<vmem>>, vector<1x1x8x384xf32>
    %91 = vector.shape_cast %90 : vector<1x1x8x384xf32> to vector<8x384xf32>
    %c0_139 = arith.constant 0 : index
    %c3_140 = arith.constant 3 : index
    %c0_141 = arith.constant 0 : index
    %c38_142 = arith.constant 38 : index
    %92 = vector.load %arg1[%c0_139, %c3_140, %c0_141, %c38_142] : memref<1x4x8x432xf32, #tpu.memory_space<vmem>>, vector<1x1x8x384xf32>
    %93 = vector.shape_cast %92 : vector<1x1x8x384xf32> to vector<8x384xf32>
    %94 = tpu.concatenate %77, %79, %81, %83, %85, %87, %89, %91, %93 in 0 : vector<8x384xf32>, vector<8x384xf32>, vector<8x384xf32>, vector<8x384xf32>, vector<8x384xf32>, vector<8x384xf32>, vector<8x384xf32>, vector<8x384xf32>, vector<8x384xf32> -> vector<72x384xf32>
    %cst_143 = arith.constant dense<0.000000e+00> : vector<8x384xf32>
    %95 = tpu.matmul %0, %94, %cst_143 {dimension_numbers = #tpu.dot_dimension_numbers<[1], [0], [0], [1], [0, 0, 1, 1], [], []>} : vector<8x72xf32>, vector<72x384xf32>, vector<8x384xf32> -> vector<8x384xf32>
    %96 = vector.broadcast %1 : vector<8x1xf32> to vector<8x384xf32>
    %97 = arith.addf %95, %96 : vector<8x384xf32>
    %cst_144 = arith.constant 0.000000e+00 : f32
    %98 = vector.broadcast %cst_144 : f32 to vector<8x384xf32>
    %99 = arith.maximumf %97, %98 : vector<8x384xf32>
    %100 = arith.maximumf %75, %99 : vector<8x384xf32>
    %c0_145 = arith.constant 0 : index
    %c0_146 = arith.constant 0 : index
    %101 = vector.load %arg5[%c0_145, %c0_146] : memref<1x128xf32, #tpu.memory_space<vmem>>, vector<1x128xf32>
    %102 = vector.extract_strided_slice %100 {offsets = [0, 0], sizes = [1, 384], strides = [1, 1]} : vector<8x384xf32> to vector<1x384xf32>
    %c0_147 = arith.constant 0 : index
    %c0_148 = arith.constant 0 : index
    %c0_149 = arith.constant 0 : index
    %103 = vector.load %arg4[%c0_147, %c0_148, %c0_149] : memref<8x384x128xf32, #tpu.memory_space<vmem>>, vector<1x384x128xf32>
    %104 = vector.shape_cast %103 : vector<1x384x128xf32> to vector<384x128xf32>
    %cst_150 = arith.constant dense<0.000000e+00> : vector<1x128xf32>
    %105 = tpu.matmul %102, %104, %cst_150 {dimension_numbers = #tpu.dot_dimension_numbers<[1], [0], [0], [1], [0, 0, 1, 1], [], []>} : vector<1x384xf32>, vector<384x128xf32>, vector<1x128xf32> -> vector<1x128xf32>
    %106 = arith.addf %101, %105 : vector<1x128xf32>
    %107 = vector.extract_strided_slice %100 {offsets = [1, 0], sizes = [1, 384], strides = [1, 1]} : vector<8x384xf32> to vector<1x384xf32>
    %c1_151 = arith.constant 1 : index
    %c0_152 = arith.constant 0 : index
    %c0_153 = arith.constant 0 : index
    %108 = vector.load %arg4[%c1_151, %c0_152, %c0_153] : memref<8x384x128xf32, #tpu.memory_space<vmem>>, vector<1x384x128xf32>
    %109 = vector.shape_cast %108 : vector<1x384x128xf32> to vector<384x128xf32>
    %cst_154 = arith.constant dense<0.000000e+00> : vector<1x128xf32>
    %110 = tpu.matmul %107, %109, %cst_154 {dimension_numbers = #tpu.dot_dimension_numbers<[1], [0], [0], [1], [0, 0, 1, 1], [], []>} : vector<1x384xf32>, vector<384x128xf32>, vector<1x128xf32> -> vector<1x128xf32>
    %111 = arith.addf %106, %110 : vector<1x128xf32>
    %112 = vector.extract_strided_slice %100 {offsets = [2, 0], sizes = [1, 384], strides = [1, 1]} : vector<8x384xf32> to vector<1x384xf32>
    %c2_155 = arith.constant 2 : index
    %c0_156 = arith.constant 0 : index
    %c0_157 = arith.constant 0 : index
    %113 = vector.load %arg4[%c2_155, %c0_156, %c0_157] : memref<8x384x128xf32, #tpu.memory_space<vmem>>, vector<1x384x128xf32>
    %114 = vector.shape_cast %113 : vector<1x384x128xf32> to vector<384x128xf32>
    %cst_158 = arith.constant dense<0.000000e+00> : vector<1x128xf32>
    %115 = tpu.matmul %112, %114, %cst_158 {dimension_numbers = #tpu.dot_dimension_numbers<[1], [0], [0], [1], [0, 0, 1, 1], [], []>} : vector<1x384xf32>, vector<384x128xf32>, vector<1x128xf32> -> vector<1x128xf32>
    %116 = arith.addf %111, %115 : vector<1x128xf32>
    %117 = vector.extract_strided_slice %100 {offsets = [3, 0], sizes = [1, 384], strides = [1, 1]} : vector<8x384xf32> to vector<1x384xf32>
    %c3_159 = arith.constant 3 : index
    %c0_160 = arith.constant 0 : index
    %c0_161 = arith.constant 0 : index
    %118 = vector.load %arg4[%c3_159, %c0_160, %c0_161] : memref<8x384x128xf32, #tpu.memory_space<vmem>>, vector<1x384x128xf32>
    %119 = vector.shape_cast %118 : vector<1x384x128xf32> to vector<384x128xf32>
    %cst_162 = arith.constant dense<0.000000e+00> : vector<1x128xf32>
    %120 = tpu.matmul %117, %119, %cst_162 {dimension_numbers = #tpu.dot_dimension_numbers<[1], [0], [0], [1], [0, 0, 1, 1], [], []>} : vector<1x384xf32>, vector<384x128xf32>, vector<1x128xf32> -> vector<1x128xf32>
    %121 = arith.addf %116, %120 : vector<1x128xf32>
    %122 = vector.extract_strided_slice %100 {offsets = [4, 0], sizes = [1, 384], strides = [1, 1]} : vector<8x384xf32> to vector<1x384xf32>
    %c4 = arith.constant 4 : index
    %c0_163 = arith.constant 0 : index
    %c0_164 = arith.constant 0 : index
    %123 = vector.load %arg4[%c4, %c0_163, %c0_164] : memref<8x384x128xf32, #tpu.memory_space<vmem>>, vector<1x384x128xf32>
    %124 = vector.shape_cast %123 : vector<1x384x128xf32> to vector<384x128xf32>
    %cst_165 = arith.constant dense<0.000000e+00> : vector<1x128xf32>
    %125 = tpu.matmul %122, %124, %cst_165 {dimension_numbers = #tpu.dot_dimension_numbers<[1], [0], [0], [1], [0, 0, 1, 1], [], []>} : vector<1x384xf32>, vector<384x128xf32>, vector<1x128xf32> -> vector<1x128xf32>
    %126 = arith.addf %121, %125 : vector<1x128xf32>
    %127 = vector.extract_strided_slice %100 {offsets = [5, 0], sizes = [1, 384], strides = [1, 1]} : vector<8x384xf32> to vector<1x384xf32>
    %c5 = arith.constant 5 : index
    %c0_166 = arith.constant 0 : index
    %c0_167 = arith.constant 0 : index
    %128 = vector.load %arg4[%c5, %c0_166, %c0_167] : memref<8x384x128xf32, #tpu.memory_space<vmem>>, vector<1x384x128xf32>
    %129 = vector.shape_cast %128 : vector<1x384x128xf32> to vector<384x128xf32>
    %cst_168 = arith.constant dense<0.000000e+00> : vector<1x128xf32>
    %130 = tpu.matmul %127, %129, %cst_168 {dimension_numbers = #tpu.dot_dimension_numbers<[1], [0], [0], [1], [0, 0, 1, 1], [], []>} : vector<1x384xf32>, vector<384x128xf32>, vector<1x128xf32> -> vector<1x128xf32>
    %131 = arith.addf %126, %130 : vector<1x128xf32>
    %132 = vector.extract_strided_slice %100 {offsets = [6, 0], sizes = [1, 384], strides = [1, 1]} : vector<8x384xf32> to vector<1x384xf32>
    %c6 = arith.constant 6 : index
    %c0_169 = arith.constant 0 : index
    %c0_170 = arith.constant 0 : index
    %133 = vector.load %arg4[%c6, %c0_169, %c0_170] : memref<8x384x128xf32, #tpu.memory_space<vmem>>, vector<1x384x128xf32>
    %134 = vector.shape_cast %133 : vector<1x384x128xf32> to vector<384x128xf32>
    %cst_171 = arith.constant dense<0.000000e+00> : vector<1x128xf32>
    %135 = tpu.matmul %132, %134, %cst_171 {dimension_numbers = #tpu.dot_dimension_numbers<[1], [0], [0], [1], [0, 0, 1, 1], [], []>} : vector<1x384xf32>, vector<384x128xf32>, vector<1x128xf32> -> vector<1x128xf32>
    %136 = arith.addf %131, %135 : vector<1x128xf32>
    %137 = vector.extract_strided_slice %100 {offsets = [7, 0], sizes = [1, 384], strides = [1, 1]} : vector<8x384xf32> to vector<1x384xf32>
    %c7 = arith.constant 7 : index
    %c0_172 = arith.constant 0 : index
    %c0_173 = arith.constant 0 : index
    %138 = vector.load %arg4[%c7, %c0_172, %c0_173] : memref<8x384x128xf32, #tpu.memory_space<vmem>>, vector<1x384x128xf32>
    %139 = vector.shape_cast %138 : vector<1x384x128xf32> to vector<384x128xf32>
    %cst_174 = arith.constant dense<0.000000e+00> : vector<1x128xf32>
    %140 = tpu.matmul %137, %139, %cst_174 {dimension_numbers = #tpu.dot_dimension_numbers<[1], [0], [0], [1], [0, 0, 1, 1], [], []>} : vector<1x384xf32>, vector<384x128xf32>, vector<1x128xf32> -> vector<1x128xf32>
    %141 = arith.addf %136, %140 : vector<1x128xf32>
    %c0_175 = arith.constant 0 : index
    %c0_176 = arith.constant 0 : index
    %c0_177 = arith.constant 0 : index
    %142 = vector.load %arg6[%c0_175, %c0_176, %c0_177] : memref<1x1x128xf32, #tpu.memory_space<vmem>>, vector<1x1x128xf32>
    %143 = vector.shape_cast %142 : vector<1x1x128xf32> to vector<1x128xf32>
    %144 = vector.shape_cast %141 : vector<1x128xf32> to vector<1x1x128xf32>
    tpu.vector_store %arg6[%c0_175, %c0_176, %c0_177], %144 {strides = array<i32>} : memref<1x1x128xf32, #tpu.memory_space<vmem>>, vector<1x1x128xf32>,
    return
  }
  func.func @transform_0(%arg0: i32) -> (i32, i32, i32, i32) {
    %c0_i32 = arith.constant 0 : i32
    %c0_i32_0 = arith.constant 0 : i32
    %c0_i32_1 = arith.constant 0 : i32
    %c0_i32_2 = arith.constant 0 : i32
    return %arg0, %c0_i32, %c0_i32_0, %c0_i32_1 : i32, i32, i32, i32
  }
  func.func @transform_1(%arg0: i32) -> (i32, i32) {
    %c0_i32 = arith.constant 0 : i32
    %c0_i32_0 = arith.constant 0 : i32
    %c0_i32_1 = arith.constant 0 : i32
    return %c0_i32, %c0_i32_0 : i32, i32
  }
  func.func @transform_2(%arg0: i32) -> (i32, i32) {
    %c0_i32 = arith.constant 0 : i32
    %c0_i32_0 = arith.constant 0 : i32
    %c0_i32_1 = arith.constant 0 : i32
    return %c0_i32, %c0_i32_0 : i32, i32
  }
  func.func @transform_3(%arg0: i32) -> (i32, i32, i32) {
    %c0_i32 = arith.constant 0 : i32
    %c0_i32_0 = arith.constant 0 : i32
    %c0_i32_1 = arith.constant 0 : i32
    %c0_i32_2 = arith.constant 0 : i32
    return %c0_i32, %c0_i32_0, %c0_i32_1 : i32, i32, i32
  }
  func.func @transform_4(%arg0: i32) -> (i32, i32) {
    %c0_i32 = arith.constant 0 : i32
    %c0_i32_0 = arith.constant 0 : i32
    %c0_i32_1 = arith.constant 0 : i32
    return %c0_i32, %c0_i32_0 : i32, i32
  }
  func.func @transform_5(%arg0: i32) -> (i32, i32, i32) {
    %c0_i32 = arith.constant 0 : i32
    %c0_i32_0 = arith.constant 0 : i32
    %c0_i32_1 = arith.constant 0 : i32
    return %arg0, %c0_i32, %c0_i32_0 : i32, i32, i32
  }
}

</mosaic_0001>

<bundles_post_ra>
// kernel: mvcnn_forward.1
= control target key start
LH: loop header
LB: loop body
LE: loop exit
PB: predicated region body
PF: predicated region fallthrough
CT: control target
= control target key end

     0   :  { %10 = vsyncpa [#allocation3], 0  ;;  %s6827_s0 = inlined_call_operand.vmem [shape: f32[2,4,8,432], index: 0, kind: input, shape index: {}]   ;;  %s6828_s1 = inlined_call_operand.vmem [shape: f32[8,72], index: 1, kind: input, shape index: {}]   ;;  %s6829_s2 = inlined_call_operand.vmem [shape: f32[8,1], index: 2, kind: input, shape index: {}]   ;;  %s6830_s3 = inlined_call_operand.vmem [shape: f32[8,384,128], index: 3, kind: input, shape index: {}]   ;;  %s6831_s4 = inlined_call_operand.vmem [shape: f32[1,128], index: 4, kind: input, shape index: {}]   ;;  %s6832_s5 = inlined_call_operand.hbm [shape: f32[2,1,128], index: 5, kind: output, shape index: {}]  }
   0x1   :  { %12 = vsyncpa [#allocation3 + $0x1], 0  ;;  %s5141_s18 = smov 0   ;;  %s5143_s19 = smov 0  }
   0x2   :  { %s5145_s20 = smov 0   ;;  %s5147_s21 = smov 0  }
   0x3 LB: > { %s5162_s22 = sadd.s32 4294967295, %s5096_s21   ;;  %s2943_s23 = sadd.s32 4294967294, %s5096_s21   ;;  %s5096_s21 = sphi %s5147_s21, %s6838_s21   ;;  %s5092_s20 = sphi %s5145_s20, %s6837_s20   ;;  %s5088_s19 = sphi %s5143_s19, %s6836_s19   ;;  %s5084_s18 = sphi %s5141_s18, %s6835_s18  }
   0x4   : > { %s5166_s24 = sadd.s32 1, %s5096_s21   ;;  %s135_s25 = sadd.s32 1, %s5092_s20 }
   0x5   : > { %s132_s26 = ssub.s32 %s5096_s21, %s5166_s24  ;;  %p145_p0 = scmp.ne.s32.totalorder %s5092_s20, %s5088_s19 }
   0x6   : > { %p133_p1 = scmp.eq.s32.totalorder %s132_s26, 0  ;;  %p146_p2 = scmp.eq.s32.totalorder %s5162_s22, 1 }
   0x7   : > { %p151_p3 = scmp.ne.s32.totalorder %s5088_s19, %s5084_s18  ;;  %p152_p4 = scmp.eq.s32.totalorder %s2943_s23, 1 }
   0x8   : > { %s5177_s27 = scalar_select %p133_p1, %s5092_s20, %s135_s25  }
   0x9   : > { %p5179_p5 = por %p146_p2, %p145_p0  ;;  %p5183_p6 = por %p152_p4, %p151_p3 }
   0xa   : > { %p2946_p7 = scmp.ge.s32.totalorder %s5096_s21, 1  ;;  %p190_p8 = scmp.lt.s32.totalorder %s5096_s21, 3 }
   0xc   : > { %p191_p9 = pnand %p2946_p7, %p190_p8 }
   0xd   : > { %p217_p10 = scmp.lt.s32.totalorder (!%p191_p9), %s5162_s22, 1  ;;  %v5098_v0 = vmov (!%p191_p9), 0.0|0.0   ;;  %s5099_s10 = smov (!%p191_p9), 126   ;;  %v5107_v12 = vmov (!%p191_p9), 0.0   ;;  %vm5108_vm0 = vmmov (!%p191_p9), 0   ;;  %vm240_vm1 = vcmask (!%p191_p9), 1039360  }
   0xe   : > { %194 = sbr.rel (%p191_p9) target bundleno = 966 (0x3c6), region = 40  ;;  %4145 = vmatprep.subr.bf16.mxu1 (!%p191_p9), %v5098_v0  ;;  %s5100_s11 = smov (!%p191_p9), 127   ;;  %425 = vmatprep.mubr.f32.mxu0 (!%p191_p9), %v5107_v12  ;;  %vm255_vm2 = vcmask (!%p191_p9), 1031168   ;;  %vm270_vm3 = vcmask (!%p191_p9), 900096   ;;  %vm285_vm4 = vcmask (!%p191_p9), 891904   ;;  %vm300_vm5 = vcmask (!%p191_p9), 883712  }
   0xf   : > { %s5101_s12 = smov (!%p191_p9), 110   ;;  %s5102_s13 = smov (!%p191_p9), 108   ;;  %3783 = vmatprep.mubr.msk.f32.mxu1 (!%p191_p9), %vm5108_vm0, %v5107_v12  ;;  %vm315_vm6 = vcmask (!%p191_p9), 752640   ;;  %vm330_vm7 = vcmask (!%p191_p9), 744448   ;;  %vm345_vm8 = vcmask (!%p191_p9), 736256   ;;  %vm357_vm9 = vcmask (!%p191_p9), 588800  }
  0x10   : > { %s5103_s14 = smov (!%p191_p9), 109   ;;  %s5104_s15 = smov (!%p191_p9), 91  }
  0x11   : > { %s5105_s16 = smov (!%p191_p9), 92   ;;  %s5106_s17 = smov (!%p191_p9), 90  }
  0x12   : > { %s215_s8 = sand.u32 (!%p191_p9), 1, %s5088_s19  }
  0x15   : > { %s218_s30 = scalar_select %p217_p10, %s5162_s22, 1 }
  0x17   : > { %s3308_s6 = sshll.u32 %s218_s30, 7 }
  0x18   : > { %s5194_s9 = scalar_lea.vmem %s6827_s0, %s3308_s6 }
  0x19   : > { %v5198_v1 = vld [vmem:[%s5194_s9 + $0x8] sm:$0xff]  ;;  %v5201_v2 = vld [vmem:[%s5194_s9 + $0x10] sm:$0xff]  ;;  %v5204_v3 = vld [vmem:[%s5194_s9] sm:$0xff] }
  0x1a   : > { %v4773_v4 = vpack.i.bf16 %v5201_v2, %v5198_v1  ;;  %v227_v5 = vld [vmem:[%s5194_s9 + $0x18] sm:$0xff]  ;;  %v5225_v7 = vld [vmem:[%s5194_s9 + $0x28] sm:$0xff]  ;;  %v5228_v8 = vld [vmem:[%s5194_s9 + $0x30] sm:$0xff] }
  0x1b   : > { %v4768_v6 = vpack.i.bf16 %v227_v5, %v5204_v3  ;;  %v4833_v9 = vpack.i.bf16 %v5228_v8, %v5225_v7  ;;  %v5237_v10 = vld [vmem:[%s5194_s9 + $0x20] sm:$0xff]  ;;  %v2954_v11 = vld [vmem:[%s5194_s9 + $0x38] sm:$0xff]  ;;  %v5262_v14 = vld [vmem:[%s5194_s9 + $0x48] sm:$0xff] }
  0x1c   : > { %4774 = vrot.lane.b32.xlu1 %v4773_v4, %s5099_s10  ;;  %4764 = vrot.lane.b32.xlu0 %v4773_v4, %s5100_s11  ;;  %v4838_v13 = vpack.i.bf16 %v2954_v11, %v5237_v10  ;;  %v5265_v15 = vld [vmem:[%s5194_s9 + $0x50] sm:$0xff]  ;;  %v5274_v17 = vld [vmem:[%s5194_s9 + $0x40] sm:$0xff] }
  0x1d   : > { %v4903_v16 = vpack.i.bf16 %v5265_v15, %v5262_v14  ;;  %v2960_v18 = vld [vmem:[%s5194_s9 + $0x58] sm:$0xff]  ;;  %v5296_v20 = vld [vmem:[%s5194_s9 + $0x68] sm:$0xff]  ;;  %v5299_v21 = vld [vmem:[%s5194_s9 + $0x70] sm:$0xff] }
  0x1e   : > { %v4908_v19 = vpack.i.bf16 %v2960_v18, %v5274_v17  ;;  %v5307_v22 = vpack.i.bf16 %v5299_v21, %v5296_v20  ;;  %v5310_v23 = vld [vmem:[%s5194_s9 + $0x60] sm:$0xff]  ;;  %v5313_v24 = vld [vmem:[%s5194_s9 + $0x78] sm:$0xff]  ;;  %s3305_s9 = sshll.u32 %s5162_s22, 4  ;;  %s5110_s22 = smov [#allocation2]  }
  0x1f   : > { %v4978_v25 = vpack.i.bf16 %v5313_v24, %v5310_v23 }
  0x20   : > { %4779 = vrot.lane.b32.xlu1 %v4773_v4, %s5101_s12  ;;  %4769 = vrot.lane.b32.xlu0 %v4768_v6, %s5100_s11 }
  0x24   : > { %4789 = vrot.lane.b32.xlu1 %v4768_v6, %s5101_s12  ;;  %4784 = vrot.lane.b32.xlu0 %v4768_v6, %s5099_s10 }
  0x28   : > { %4799 = vrot.lane.b32.xlu1 %v4773_v4, %s5102_s13  ;;  %4794 = vrot.lane.b32.xlu0 %v4773_v4, %s5103_s14 }
  0x2c   : > { %4809 = vrot.lane.b32.xlu1 %v4768_v6, %s5102_s13  ;;  %4804 = vrot.lane.b32.xlu0 %v4768_v6, %s5103_s14 }
  0x30   : > { %4819 = vrot.lane.b32.xlu1 %v4773_v4, %s5104_s15  ;;  %4814 = vrot.lane.b32.xlu0 %v4773_v4, %s5105_s16 }
  0x34   : > { %4829 = vrot.lane.b32.xlu1 %v4768_v6, %s5104_s15  ;;  %4824 = vrot.lane.b32.xlu0 %v4768_v6, %s5105_s16 }
  0x38   : > { %341 = vrot.lane.b32.xlu1 %v5201_v2, %s5106_s17  ;;  %339 = vrot.lane.b32.xlu0 %v5198_v1, %s5106_s17 }
  0x3c   : > { %337 = vrot.lane.b32.xlu1 %v5204_v3, %s5106_s17  ;;  %4834 = vrot.lane.b32.xlu0 %v4833_v9, %s5100_s11 }
  0x40   : > { %4844 = vrot.lane.b32.xlu1 %v4833_v9, %s5099_s10  ;;  %4839 = vrot.lane.b32.xlu0 %v4838_v13, %s5100_s11 }
  0x44   : > { %4854 = vrot.lane.b32.xlu1 %v4838_v13, %s5099_s10  ;;  %4849 = vrot.lane.b32.xlu0 %v4833_v9, %s5101_s12 }
  0x48   : > { %343 = vrot.lane.b32.xlu1 %v227_v5, %s5106_s17  ;;  %4859 = vrot.lane.b32.xlu0 %v4838_v13, %s5101_s12 }
  0x4c   : > { %4869 = vrot.lane.b32.xlu1 %v4833_v9, %s5102_s13  ;;  %4864 = vrot.lane.b32.xlu0 %v4833_v9, %s5103_s14 }
  0x50   : > { %4879 = vrot.lane.b32.xlu1 %v4838_v13, %s5102_s13  ;;  %4874 = vrot.lane.b32.xlu0 %v4838_v13, %s5103_s14 }
  0x54   : > { %4889 = vrot.lane.b32.xlu1 %v4833_v9, %s5104_s15  ;;  %4884 = vrot.lane.b32.xlu0 %v4833_v9, %s5105_s16 }
  0x58   : > { %4899 = vrot.lane.b32.xlu1 %v4838_v13, %s5104_s15  ;;  %4894 = vrot.lane.b32.xlu0 %v4838_v13, %s5105_s16 }
  0x5c   : > { %616 = vrot.lane.b32.xlu1 %v5228_v8, %s5106_s17  ;;  %614 = vrot.lane.b32.xlu0 %v5225_v7, %s5106_s17 }
  0x60   : > { %612 = vrot.lane.b32.xlu1 %v5237_v10, %s5106_s17  ;;  %4904 = vrot.lane.b32.xlu0 %v4903_v16, %s5100_s11 }
  0x64   : > { %4914 = vrot.lane.b32.xlu1 %v4903_v16, %s5099_s10  ;;  %4909 = vrot.lane.b32.xlu0 %v4908_v19, %s5100_s11 }
  0x68   : > { %4924 = vrot.lane.b32.xlu1 %v4908_v19, %s5099_s10  ;;  %4919 = vrot.lane.b32.xlu0 %v4903_v16, %s5101_s12 }
  0x6c   : > { %618 = vrot.lane.b32.xlu1 %v2954_v11, %s5106_s17  ;;  %4929 = vrot.lane.b32.xlu0 %v4908_v19, %s5101_s12 }
  0x70   : > { %4939 = vrot.lane.b32.xlu1 %v4903_v16, %s5102_s13  ;;  %4934 = vrot.lane.b32.xlu0 %v4903_v16, %s5103_s14 }
  0x74   : > { %4949 = vrot.lane.b32.xlu1 %v4908_v19, %s5102_s13  ;;  %4944 = vrot.lane.b32.xlu0 %v4908_v19, %s5103_s14 }
  0x78   : > { %4959 = vrot.lane.b32.xlu1 %v4903_v16, %s5104_s15  ;;  %4954 = vrot.lane.b32.xlu0 %v4903_v16, %s5105_s16 }
  0x7c   : > { %4969 = vrot.lane.b32.xlu1 %v4908_v19, %s5104_s15  ;;  %4964 = vrot.lane.b32.xlu0 %v4908_v19, %s5105_s16 }
  0x80   : > { %884 = vrot.lane.b32.xlu1 %v5265_v15, %s5106_s17  ;;  %882 = vrot.lane.b32.xlu0 %v5262_v14, %s5106_s17 }
  0x84   : > { %880 = vrot.lane.b32.xlu1 %v5274_v17, %s5106_s17  ;;  %4974 = vrot.lane.b32.xlu0 %v5307_v22, %s5100_s11 }
  0x88   : > { %4984 = vrot.lane.b32.xlu1 %v5307_v22, %s5099_s10  ;;  %4979 = vrot.lane.b32.xlu0 %v4978_v25, %s5100_s11 }
  0x8c   : > { %4994 = vrot.lane.b32.xlu1 %v4978_v25, %s5099_s10  ;;  %4989 = vrot.lane.b32.xlu0 %v5307_v22, %s5101_s12  ;;  %s216_s10 = scalar_lea.vmem [#allocation2], %s215_s8 }
  0x8d   : > { %s2888_s11 = sshll.u32 %s216_s10, 4  ;;  %s6787_s11 = int_to_ptr.vmem [resolvable:$true] %s2888_s11 }
  0x8e   : > { %v4775_v26 = vpop.permute.xlu1 %4774  ;;  %v4765_v27 = vpop.permute.xlu0 %4764 }
  0x8f   : > { %v4777_v28 = vunpack.i.h.bf16 %v4775_v26  ;;  %v4776_v29 = vunpack.i.l.bf16 %v4775_v26  ;;  %v4767_v30 = vunpack.i.h.bf16 %v4765_v27  ;;  %v4766_v31 = vunpack.i.l.bf16 %v4765_v27 }
  0x90   : > { %886 = vrot.lane.b32.xlu1 %v2960_v18, %s5106_s17  ;;  %4999 = vrot.lane.b32.xlu0 %v4978_v25, %s5101_s12 }
  0x91   : > { %v242_v32 = vsel %vm240_vm1, %v4766_v31, %v4767_v30  ;;  %v257_v36 = vsel %vm255_vm2, %v4776_v29, %v4777_v28 }
  0x92   : > { %v4780_v33 = vpop.permute.xlu1 %4779  ;;  %v4770_v34 = vpop.permute.xlu0 %4769  ;;  %v4129_v35 = vpack.c.bf16 %v242_v32, %v5198_v1 }
  0x93   : > { %v4782_v37 = vunpack.i.h.bf16 %v4780_v33  ;;  %v4781_v38 = vunpack.i.l.bf16 %v4780_v33  ;;  %v4772_v39 = vunpack.i.h.bf16 %v4770_v34  ;;  %v4771_v40 = vunpack.i.l.bf16 %v4770_v34 }
  0x94   : > { %4130 = vmatprep.subr.bf16.mxu0 %v4129_v35  ;;  %5009 = vrot.lane.b32.xlu1 %v5307_v22, %s5102_s13 }
  0x95   : > { %5004 = vrot.lane.b32.xlu0 %v5307_v22, %s5103_s14  ;;  %v241_v41 = vsel %vm240_vm1, %v4771_v40, %v4766_v31  ;;  %v243_v42 = vsel %vm240_vm1, %v4767_v30, %v4772_v39  ;;  %v272_v43 = vsel %vm270_vm3, %v4781_v38, %v4782_v37 }
  0x96   : > { %v4790_v44 = vpop.permute.xlu1 %4789  ;;  %v4785_v45 = vpop.permute.xlu0 %4784  ;;  %v4131_v46 = vpack.c.bf16 %v241_v41, %v5204_v3  ;;  %v4146_v47 = vpack.c.bf16 %v243_v42, %v5201_v2  ;;  %v4133_v48 = vpack.c.bf16 %v272_v43, %v257_v36 }
  0x97   : > { %v4792_v49 = vunpack.i.h.bf16 %v4790_v44  ;;  %v4791_v50 = vunpack.i.l.bf16 %v4790_v44  ;;  %v4787_v51 = vunpack.i.h.bf16 %v4785_v45  ;;  %v4786_v52 = vunpack.i.l.bf16 %v4785_v45 }
  0x98   : > { %5019 = vrot.lane.b32.xlu1 %v4978_v25, %s5102_s13  ;;  %4132 = vmatpush1.bf16.msra.mxu0 %v4131_v46 }
  0x99   : > { %5014 = vrot.lane.b32.xlu0 %v4978_v25, %s5103_s14  ;;  %4147 = vmatpush3.bf16.msra.mxu1 %v4146_v47  ;;  %v256_v53 = vsel %vm255_vm2, %v4786_v52, %v4776_v29  ;;  %v271_v54 = vsel %vm270_vm3, %v4791_v50, %v4781_v38  ;;  %v258_v55 = vsel %vm255_vm2, %v4777_v28, %v4787_v51  ;;  %v5109_v51 = vmov 0   ;;  %s6785_s14 = scalar_lea.hbm %s6832_s5, %s3305_s9 }
  0x9a   : > { %4134 = vmatprep.subr.bf16.mxu0 %v4133_v48  ;;  %v4800_v56 = vpop.permute.xlu1 %4799  ;;  %v4795_v57 = vpop.permute.xlu0 %4794  ;;  %4148 = vmatprep.subr.bf16.mxu1 %v5098_v0  ;;  %v4135_v58 = vpack.c.bf16 %v271_v54, %v256_v53  ;;  %v273_v59 = vsel %vm270_vm3, %v4782_v37, %v4792_v49 }
  0x9b   : > { %v4802_v60 = vunpack.i.h.bf16 %v4800_v56  ;;  %v4801_v61 = vunpack.i.l.bf16 %v4800_v56  ;;  %v4797_v62 = vunpack.i.h.bf16 %v4795_v57  ;;  %v4796_v63 = vunpack.i.l.bf16 %v4795_v57  ;;  %5033 = vset.pattern.permute.xlu0 %v5109_v51  ;;  %v223_v56 = vld [vmem:[%s6829_s2] sm:$0xff] }
  0x9c   : > { %5029 = vrot.lane.b32.xlu1 %v5307_v22, %s5104_s15  ;;  %4136 = vmatpush1.bf16.msra.mxu0 %v4135_v58  ;;  %v4149_v1 = vpack.c.bf16 %v273_v59, %v258_v55  ;;  %v5386_v55 = vld [vmem:[%s6828_s1] sm:$0xff] }
  0x9d   : > { %5024 = vrot.lane.b32.xlu0 %v5307_v22, %s5105_s16  ;;  %v287_v2 = vsel %vm285_vm4, %v4796_v63, %v4797_v62  ;;  %v302_v3 = vsel %vm300_vm5, %v4801_v61, %v4802_v60 }
  0x9e   : > { %4150 = vmatpush3.bf16.msra.mxu1 %v4149_v1  ;;  %v4810_v4 = vpop.permute.xlu1 %4809  ;;  %v4805_v5 = vpop.permute.xlu0 %4804  ;;  %v4137_v6 = vpack.c.bf16 %v302_v3, %v287_v2 }
  0x9f   : > { %v4812_v9 = vunpack.i.h.bf16 %v4810_v4  ;;  %v4811_v11 = vunpack.i.l.bf16 %v4810_v4  ;;  %v4807_v13 = vunpack.i.h.bf16 %v4805_v5  ;;  %v4806_v16 = vunpack.i.l.bf16 %v4805_v5  ;;  %4151 = vmatprep.subr.bf16.mxu1 %v5098_v0 }
  0xa0   : > { %1134 = vrot.lane.b32.xlu1 %v5310_v23, %s5104_s15  ;;  %4138 = vmatprep.subr.bf16.mxu0 %v4137_v6 }
  0xa1   : > { %1120 = vrot.lane.b32.xlu0 %v5310_v23, %s5105_s16  ;;  %v286_v18 = vsel %vm285_vm4, %v4806_v16, %v4796_v63  ;;  %v301_v19 = vsel %vm300_vm5, %v4811_v11, %v4801_v61  ;;  %v288_v22 = vsel %vm285_vm4, %v4797_v62, %v4807_v13  ;;  %v303_v25 = vsel %vm300_vm5, %v4802_v60, %v4812_v9 }
  0xa2   : > { %v4820_v26 = vpop.permute.xlu1 %4819  ;;  %v4815_v27 = vpop.permute.xlu0 %4814  ;;  %v4139_v28 = vpack.c.bf16 %v301_v19, %v286_v18  ;;  %v4152_v29 = vpack.c.bf16 %v303_v25, %v288_v22 }
  0xa3   : > { %v4822_v30 = vunpack.i.h.bf16 %v4820_v26  ;;  %v4821_v31 = vunpack.i.l.bf16 %v4820_v26  ;;  %v4817_v32 = vunpack.i.h.bf16 %v4815_v27  ;;  %v4816_v33 = vunpack.i.l.bf16 %v4815_v27 }
  0xa4   : > { %1152 = vrot.lane.b32.xlu1 %v5299_v21, %s5106_s17  ;;  %4140 = vmatpush1.bf16.msra.mxu0 %v4139_v28 }
  0xa5   : > { %1150 = vrot.lane.b32.xlu0 %v5296_v20, %s5106_s17  ;;  %4153 = vmatpush3.bf16.msra.mxu1 %v4152_v29  ;;  %v317_v34 = vsel %vm315_vm6, %v4816_v33, %v4817_v32  ;;  %v332_v35 = vsel %vm330_vm7, %v4821_v31, %v4822_v30 }
  0xa6   : > { %v4830_v36 = vpop.permute.xlu1 %4829  ;;  %v4825_v37 = vpop.permute.xlu0 %4824  ;;  %v4141_v38 = vpack.c.bf16 %v332_v35, %v317_v34  ;;  %4154 = vmatprep.subr.bf16.mxu1 %v5098_v0 }
  0xa7   : > { %v4832_v39 = vunpack.i.h.bf16 %v4830_v36  ;;  %v4831_v40 = vunpack.i.l.bf16 %v4830_v36  ;;  %v4827_v41 = vunpack.i.h.bf16 %v4825_v37  ;;  %v4826_v42 = vunpack.i.l.bf16 %v4825_v37 }
  0xa8   : > { %1126 = vrot.lane.b32.xlu1 %v5313_v24, %s5105_s16  ;;  %4142 = vmatprep.subr.bf16.mxu0 %v4141_v38  ;;  %s5034_s16 = scalar_lea.vmem %s6787_s11, 16 }
  0xa9   : > { %1148 = vrot.lane.b32.xlu0 %v5310_v23, %s5106_s17  ;;  %v316_v43 = vsel %vm315_vm6, %v4826_v42, %v4816_v33  ;;  %v331_v44 = vsel %vm330_vm7, %v4831_v40, %v4821_v31  ;;  %v318_v45 = vsel %vm315_vm6, %v4817_v32, %v4827_v41  ;;  %v333_v46 = vsel %vm330_vm7, %v4822_v30, %v4832_v39  ;;  %p5035_p11 = scmp.ne.s32.totalorder %s6787_s11, %s5034_s16 }
  0xaa   : > { %v342_v47 = vpop.permute.xlu1 %341  ;;  %v340_v48 = vpop.permute.xlu0 %339  ;;  %v4143_v49 = vpack.c.bf16 %v331_v44, %v316_v43  ;;  %v4155_v50 = vpack.c.bf16 %v333_v46, %v318_v45 }
  0xab   : > { %v347_v52 = vsel %vm345_vm8, %v340_v48, %v342_v47  ;;  %p5036_p12 = pnand %p5035_p11, %p5179_p5 }
  0xac   : > { %1154 = vrot.lane.b32.xlu1 %v5313_v24, %s5106_s17  ;;  %4144 = vmatpush1.bf16.msra.mxu0 %v4143_v49  ;;  %s5038_s17 = sshll.u32 %s5110_s22, 4  ;;  %s5039_s17 = int_to_ptr.vmem [resolvable:$false] %s5038_s17 }
  0xad   : > { %1140 = vrot.lane.b32.xlu0 %v5313_v24, %s5104_s15  ;;  %4156 = vmatpush3.bf16.msra.mxu1 %v4155_v50  ;;  %s2876_s15 = scalar_lea.sflag [#allocation3], %s215_s8  ;;  %p5037_p13 = pneg %p5036_p12 }
  0xae   : > { %377 = vmatprep.subr.mxu0 %v347_v52  ;;  %v338_v53 = vpop.permute.xlu1 %337  ;;  %v4835_v54 = vpop.permute.xlu0 %4834  ;;  %3781 = vmatprep.subr.mxu1 %v5107_v12  ;;  %s5040_s23 = scalar_lea.vmem %s5039_s17, 32  ;;  %p5041_p0 = scmp.lt.s32.totalorder %s6787_s11, %s5039_s17 }
  0xaf   : > { %v4837_v57 = vunpack.i.h.bf16 %v4835_v54  ;;  %v4836_v58 = vunpack.i.l.bf16 %v4835_v54  ;;  %v346_v24 = vsel %vm345_vm8, %v338_v53, %v340_v48  ;;  %p5042_p1 = scmp.lt.s32.totalorder %s5040_s23, %s5034_s16 }
  0xb0   : > { %378 = vmatpush1.msra.mxu0 %v346_v24 }
  0xb1   : > { %v523_v59 = vsel %vm240_vm1, %v4836_v58, %v4837_v57  ;;  %2949 = vmatmul.mubr.msk.f32.vlgmr.msra.gmra.mrb[0].mxu0 %vm357_vm9, %v5386_v55  ;;  %354 = vperm.xlu0 %5033, %v223_v56   ;;  %p5043_p2 = por %p5042_p1, %p5041_p0 }
  0xb2   : > { %v4845_v60 = vpop.permute.xlu1 %4844  ;;  %v4840_v61 = vpop.permute.xlu0 %4839  ;;  %v4157_v62 = vpack.c.bf16 %v523_v59, %v5225_v7  ;;  %690 = vmatprep.mubr.f32.mxu0 %v5107_v12 }
  0xb3   : > { %v4847_v63 = vunpack.i.h.bf16 %v4845_v60  ;;  %v4846_v1 = vunpack.i.l.bf16 %v4845_v60  ;;  %v4841_v2 = vunpack.i.l.bf16 %v4840_v61  ;;  %v4842_v3 = vunpack.i.h.bf16 %v4840_v61  ;;  %p5044_p3 = pnand %p5043_p2, %p5037_p13 }
  0xb4   : > { %4158 = vmatprep.subr.bf16.mxu0 %v4157_v62 }
  0xb5   : > { %v522_v4 = vsel %vm240_vm1, %v4841_v2, %v4836_v58  ;;  %v537_v16 = vsel %vm255_vm2, %v4846_v1, %v4847_v63  ;;  %v524_v7 = vsel %vm240_vm1, %v4837_v57, %v4842_v3 }
  0xb6   : > { %v4159_v5 = vpack.c.bf16 %v522_v4, %v5237_v10  ;;  %v4855_v6 = vpop.permute.xlu1 %4854  ;;  %v4850_v9 = vpop.permute.xlu0 %4849  ;;  %v4174_v30 = vpack.c.bf16 %v524_v7, %v5228_v8 }
  0xb7   : > { %v4852_v11 = vunpack.i.h.bf16 %v4850_v9  ;;  %v4851_v13 = vunpack.i.l.bf16 %v4850_v9  ;;  %v4856_v18 = vunpack.i.l.bf16 %v4855_v6  ;;  %v4857_v22 = vunpack.i.h.bf16 %v4855_v6 }
  0xb8   : > { %4160 = vmatpush1.bf16.msra.mxu0 %v4159_v5 }
  0xb9   : > { %v551_v19 = vsel %vm270_vm3, %v4851_v13, %v4852_v11  ;;  %v536_v31 = vsel %vm255_vm2, %v4856_v18, %v4846_v1  ;;  %v538_v34 = vsel %vm255_vm2, %v4847_v63, %v4857_v22 }
  0xba   : > { %v344_v25 = vpop.permute.xlu1 %343  ;;  %v4860_v26 = vpop.permute.xlu0 %4859  ;;  %v4161_v27 = vpack.c.bf16 %v551_v19, %v537_v16 }
  0xbb   : > { %v4862_v28 = vunpack.i.h.bf16 %v4860_v26  ;;  %v4861_v29 = vunpack.i.l.bf16 %v4860_v26  ;;  %v348_v10 = vsel %vm345_vm8, %v342_v47, %v344_v25 }
  0xbc   : > { %3782 = vmatpush3.msra.mxu1 %v348_v10  ;;  %4162 = vmatprep.subr.bf16.mxu0 %v4161_v27 }
  0xbd   : > { %v550_v32 = vsel %vm270_vm3, %v4861_v29, %v4851_v13  ;;  %v552_v33 = vsel %vm270_vm3, %v4852_v11, %v4862_v28  ;;  %4173 = vmatprep.subr.bf16.mxu1 %v5098_v0  ;;  %3784 = vmatmul.mubr.msk.f32.vlgmr.msra.gmra.mrb[0].mxu1 %vm357_vm9, %v5386_v55 }
  0xbe   : > { %v4163_v35 = vpack.c.bf16 %v550_v32, %v536_v31  ;;  %v4870_v36 = vpop.permute.xlu1 %4869  ;;  %v4865_v37 = vpop.permute.xlu0 %4864  ;;  %4175 = vmatpush3.bf16.msra.mxu1 %v4174_v30  ;;  %3804 = vmatprep.mubr.msk.f32.mxu1 %vm5108_vm0, %v5107_v12  ;;  %v4177_v41 = vpack.c.bf16 %v552_v33, %v538_v34 }
  0xbf   : > { %v4872_v8 = vunpack.i.h.bf16 %v4870_v36  ;;  %v4871_v38 = vunpack.i.l.bf16 %v4870_v36  ;;  %v4867_v39 = vunpack.i.h.bf16 %v4865_v37  ;;  %v4866_v40 = vunpack.i.l.bf16 %v4865_v37  ;;  %4176 = vmatprep.subr.bf16.mxu1 %v5098_v0 }
  0xc0   : > { %4164 = vmatpush1.bf16.msra.mxu0 %v4163_v35 }
  0xc1   : > { %v565_v42 = vsel %vm285_vm4, %v4866_v40, %v4867_v39  ;;  %v579_v43 = vsel %vm300_vm5, %v4871_v38, %v4872_v8 }
  0xc2   : > { %v4880_v44 = vpop.permute.xlu1 %4879  ;;  %v4875_v45 = vpop.permute.xlu0 %4874  ;;  %4178 = vmatpush3.bf16.msra.mxu1 %v4177_v41  ;;  %v4165_v46 = vpack.c.bf16 %v579_v43, %v565_v42 }
  0xc3   : > { %v4882_v47 = vunpack.i.h.bf16 %v4880_v44  ;;  %v4881_v48 = vunpack.i.l.bf16 %v4880_v44  ;;  %v4877_v49 = vunpack.i.h.bf16 %v4875_v45  ;;  %v4876_v50 = vunpack.i.l.bf16 %v4875_v45  ;;  %4179 = vmatprep.subr.bf16.mxu1 %v5098_v0 }
  0xc4   : > { %4166 = vmatprep.subr.bf16.mxu0 %v4165_v46 }
  0xc5   : > { %v578_v51 = vsel %vm300_vm5, %v4881_v48, %v4871_v38  ;;  %v580_v52 = vsel %vm300_vm5, %v4872_v8, %v4882_v47  ;;  %v564_v53 = vsel %vm285_vm4, %v4876_v50, %v4866_v40  ;;  %v566_v54 = vsel %vm285_vm4, %v4867_v39, %v4877_v49 }
  0xc6   : > { %v4167_v56 = vpack.c.bf16 %v578_v51, %v564_v53  ;;  %v4180_v57 = vpack.c.bf16 %v580_v52, %v566_v54  ;;  %v4890_v58 = vpop.permute.xlu1 %4889  ;;  %v4885_v24 = vpop.permute.xlu0 %4884 }
  0xc7   : > { %v4892_v59 = vunpack.i.h.bf16 %v4890_v58  ;;  %v4891_v60 = vunpack.i.l.bf16 %v4890_v58  ;;  %v4887_v61 = vunpack.i.h.bf16 %v4885_v24  ;;  %v4886_v62 = vunpack.i.l.bf16 %v4885_v24 }
  0xc8   : > { %4168 = vmatpush1.bf16.msra.mxu0 %v4167_v56  ;;  %4181 = vmatpush3.bf16.msra.mxu1 %v4180_v57 }
  0xc9   : > { %v593_v63 = vsel %vm315_vm6, %v4886_v62, %v4887_v61  ;;  %v607_v1 = vsel %vm330_vm7, %v4891_v60, %v4892_v59  ;;  %4182 = vmatprep.subr.bf16.mxu1 %v5098_v0 }
  0xca   : > { %v4900_v2 = vpop.permute.xlu1 %4899  ;;  %v4895_v3 = vpop.permute.xlu0 %4894  ;;  %v4169_v4 = vpack.c.bf16 %v607_v1, %v593_v63 }
  0xcb   : > { %v4902_v5 = vunpack.i.h.bf16 %v4900_v2  ;;  %v4901_v6 = vunpack.i.l.bf16 %v4900_v2  ;;  %v4897_v9 = vunpack.i.h.bf16 %v4895_v3  ;;  %v4896_v11 = vunpack.i.l.bf16 %v4895_v3 }
  0xcc   : > { %4170 = vmatprep.subr.bf16.mxu0 %v4169_v4 }
  0xcd   : > { %v606_v13 = vsel %vm330_vm7, %v4901_v6, %v4891_v60  ;;  %v608_v16 = vsel %vm330_vm7, %v4892_v59, %v4902_v5  ;;  %v592_v7 = vsel %vm315_vm6, %v4896_v11, %v4886_v62  ;;  %v594_v18 = vsel %vm315_vm6, %v4887_v61, %v4897_v9 }
  0xce   : > { %v4171_v19 = vpack.c.bf16 %v606_v13, %v592_v7  ;;  %v4183_v22 = vpack.c.bf16 %v608_v16, %v594_v18  ;;  %v617_v25 = vpop.permute.xlu1 %616  ;;  %v615_v26 = vpop.permute.xlu0 %614 }
  0xcf   : > { %v621_v27 = vsel %vm345_vm8, %v615_v26, %v617_v25 }
  0xd0   : > { %4172 = vmatpush1.bf16.msra.mxu0 %v4171_v19  ;;  %4184 = vmatpush3.bf16.msra.mxu1 %v4183_v22 }
  0xd1   : > { %642 = vmatprep.subr.mxu0 %v621_v27  ;;  %3802 = vmatprep.subr.mxu1 %v5107_v12 }
  0xd2   : > { %v613_v28 = vpop.permute.xlu1 %612  ;;  %v4905_v29 = vpop.permute.xlu0 %4904 }
  0xd3   : > { %v620_v10 = vsel %vm345_vm8, %v613_v28, %v615_v26  ;;  %v4907_v30 = vunpack.i.h.bf16 %v4905_v29  ;;  %v4906_v31 = vunpack.i.l.bf16 %v4905_v29 }
  0xd4   : > { %643 = vmatpush1.msra.mxu0 %v620_v10 }
  0xd5   : > { %v791_v32 = vsel %vm240_vm1, %v4906_v31, %v4907_v30  ;;  %2955 = vmatmul.mubr.msk.f32.vlgmr.msra.gmra.mrb[2].mxu0 %vm357_vm9, %v5386_v55 }
  0xd6   : > { %v4915_v33 = vpop.permute.xlu1 %4914  ;;  %v4910_v34 = vpop.permute.xlu0 %4909  ;;  %v4185_v35 = vpack.c.bf16 %v791_v32, %v5262_v14  ;;  %958 = vmatprep.mubr.f32.mxu0 %v5107_v12 }
  0xd7   : > { %v4917_v36 = vunpack.i.h.bf16 %v4915_v33  ;;  %v4916_v37 = vunpack.i.l.bf16 %v4915_v33  ;;  %v4911_v8 = vunpack.i.l.bf16 %v4910_v34  ;;  %v4912_v38 = vunpack.i.h.bf16 %v4910_v34 }
  0xd8   : > { %4186 = vmatprep.subr.bf16.mxu0 %v4185_v35 }
  0xd9   : > { %v790_v39 = vsel %vm240_vm1, %v4911_v8, %v4906_v31  ;;  %v805_v45 = vsel %vm255_vm2, %v4916_v37, %v4917_v36  ;;  %v792_v14 = vsel %vm240_vm1, %v4907_v30, %v4912_v38 }
  0xda   : > { %v4187_v40 = vpack.c.bf16 %v790_v39, %v5274_v17  ;;  %v4925_v41 = vpop.permute.xlu1 %4924  ;;  %v4920_v42 = vpop.permute.xlu0 %4919  ;;  %v4202_v54 = vpack.c.bf16 %v792_v14, %v5265_v15 }
  0xdb   : > { %v4922_v43 = vunpack.i.h.bf16 %v4920_v42  ;;  %v4921_v44 = vunpack.i.l.bf16 %v4920_v42  ;;  %v4926_v46 = vunpack.i.l.bf16 %v4925_v41  ;;  %v4927_v48 = vunpack.i.h.bf16 %v4925_v41 }
  0xdc   : > { %4188 = vmatpush1.bf16.msra.mxu0 %v4187_v40 }
  0xdd   : > { %v819_v47 = vsel %vm270_vm3, %v4921_v44, %v4922_v43  ;;  %v804_v56 = vsel %vm255_vm2, %v4926_v46, %v4916_v37  ;;  %v806_v24 = vsel %vm255_vm2, %v4917_v36, %v4927_v48 }
  0xde   : > { %v619_v49 = vpop.permute.xlu1 %618  ;;  %v4930_v50 = vpop.permute.xlu0 %4929  ;;  %v4189_v51 = vpack.c.bf16 %v819_v47, %v805_v45 }
  0xdf   : > { %v622_v52 = vsel %vm345_vm8, %v617_v25, %v619_v49  ;;  %v4932_v53 = vunpack.i.h.bf16 %v4930_v50  ;;  %v4931_v17 = vunpack.i.l.bf16 %v4930_v50 }
  0xe0   : > { %3803 = vmatpush3.msra.mxu1 %v622_v52  ;;  %4190 = vmatprep.subr.bf16.mxu0 %v4189_v51 }
  0xe1   : > { %v818_v57 = vsel %vm270_vm3, %v4931_v17, %v4921_v44  ;;  %v820_v58 = vsel %vm270_vm3, %v4922_v43, %v4932_v53  ;;  %4201 = vmatprep.subr.bf16.mxu1 %v5098_v0  ;;  %3805 = vmatmul.mubr.msk.f32.vlgmr.msra.gmra.mrb[2].mxu1 %vm357_vm9, %v5386_v55 }
  0xe2   : > { %v4191_v59 = vpack.c.bf16 %v818_v57, %v804_v56  ;;  %v4940_v60 = vpop.permute.xlu1 %4939  ;;  %v4935_v61 = vpop.permute.xlu0 %4934  ;;  %4203 = vmatpush3.bf16.msra.mxu1 %v4202_v54  ;;  %3825 = vmatprep.mubr.msk.f32.mxu1 %vm5108_vm0, %v5107_v12  ;;  %v4205_v2 = vpack.c.bf16 %v820_v58, %v806_v24 }
  0xe3   : > { %v4942_v15 = vunpack.i.h.bf16 %v4940_v60  ;;  %v4941_v62 = vunpack.i.l.bf16 %v4940_v60  ;;  %v4937_v63 = vunpack.i.h.bf16 %v4935_v61  ;;  %v4936_v1 = vunpack.i.l.bf16 %v4935_v61  ;;  %4204 = vmatprep.subr.bf16.mxu1 %v5098_v0 }
  0xe4   : > { %4192 = vmatpush1.bf16.msra.mxu0 %v4191_v59 }
  0xe5   : > { %v833_v3 = vsel %vm285_vm4, %v4936_v1, %v4937_v63  ;;  %v847_v4 = vsel %vm300_vm5, %v4941_v62, %v4942_v15 }
  0xe6   : > { %v4950_v5 = vpop.permute.xlu1 %4949  ;;  %v4945_v6 = vpop.permute.xlu0 %4944  ;;  %4206 = vmatpush3.bf16.msra.mxu1 %v4205_v2  ;;  %v4193_v9 = vpack.c.bf16 %v847_v4, %v833_v3 }
  0xe7   : > { %v4952_v11 = vunpack.i.h.bf16 %v4950_v5  ;;  %v4951_v13 = vunpack.i.l.bf16 %v4950_v5  ;;  %v4947_v16 = vunpack.i.h.bf16 %v4945_v6  ;;  %v4946_v7 = vunpack.i.l.bf16 %v4945_v6  ;;  %4207 = vmatprep.subr.bf16.mxu1 %v5098_v0 }
  0xe8   : > { %4194 = vmatprep.subr.bf16.mxu0 %v4193_v9 }
  0xe9   : > { %v846_v18 = vsel %vm300_vm5, %v4951_v13, %v4941_v62  ;;  %v848_v19 = vsel %vm300_vm5, %v4942_v15, %v4952_v11  ;;  %v832_v22 = vsel %vm285_vm4, %v4946_v7, %v4936_v1  ;;  %v834_v25 = vsel %vm285_vm4, %v4937_v63, %v4947_v16 }
  0xea   : > { %v4195_v26 = vpack.c.bf16 %v846_v18, %v832_v22  ;;  %v4208_v27 = vpack.c.bf16 %v848_v19, %v834_v25  ;;  %v4960_v28 = vpop.permute.xlu1 %4959  ;;  %v4955_v29 = vpop.permute.xlu0 %4954 }
  0xeb   : > { %v4962_v10 = vunpack.i.h.bf16 %v4960_v28  ;;  %v4961_v30 = vunpack.i.l.bf16 %v4960_v28  ;;  %v4957_v31 = vunpack.i.h.bf16 %v4955_v29  ;;  %v4956_v32 = vunpack.i.l.bf16 %v4955_v29 }
  0xec   : > { %4196 = vmatpush1.bf16.msra.mxu0 %v4195_v26  ;;  %4209 = vmatpush3.bf16.msra.mxu1 %v4208_v27 }
  0xed   : > { %v861_v33 = vsel %vm315_vm6, %v4956_v32, %v4957_v31  ;;  %v875_v34 = vsel %vm330_vm7, %v4961_v30, %v4962_v10  ;;  %4210 = vmatprep.subr.bf16.mxu1 %v5098_v0 }
  0xee   : > { %v4970_v35 = vpop.permute.xlu1 %4969  ;;  %v4965_v36 = vpop.permute.xlu0 %4964  ;;  %v4197_v37 = vpack.c.bf16 %v875_v34, %v861_v33 }
  0xef   : > { %v4972_v8 = vunpack.i.h.bf16 %v4970_v35  ;;  %v4971_v38 = vunpack.i.l.bf16 %v4970_v35  ;;  %v4967_v39 = vunpack.i.h.bf16 %v4965_v36  ;;  %v4966_v40 = vunpack.i.l.bf16 %v4965_v36 }
  0xf0   : > { %4198 = vmatprep.subr.bf16.mxu0 %v4197_v37 }
  0xf1   : > { %v874_v41 = vsel %vm330_vm7, %v4971_v38, %v4961_v30  ;;  %v876_v42 = vsel %vm330_vm7, %v4962_v10, %v4972_v8  ;;  %v860_v43 = vsel %vm315_vm6, %v4966_v40, %v4956_v32  ;;  %v862_v44 = vsel %vm315_vm6, %v4957_v31, %v4967_v39 }
  0xf2   : > { %v4199_v45 = vpack.c.bf16 %v874_v41, %v860_v43  ;;  %v4211_v14 = vpack.c.bf16 %v876_v42, %v862_v44  ;;  %v885_v46 = vpop.permute.xlu1 %884  ;;  %v883_v47 = vpop.permute.xlu0 %882 }
  0xf3   : > { %v889_v48 = vsel %vm345_vm8, %v883_v47, %v885_v46 }
  0xf4   : > { %4200 = vmatpush1.bf16.msra.mxu0 %v4199_v45  ;;  %4212 = vmatpush3.bf16.msra.mxu1 %v4211_v14 }
  0xf5   : > { %910 = vmatprep.subr.mxu0 %v889_v48  ;;  %3823 = vmatprep.subr.mxu1 %v5107_v12 }
  0xf6   : > { %v881_v49 = vpop.permute.xlu1 %880  ;;  %v4975_v50 = vpop.permute.xlu0 %4974 }
  0xf7   : > { %v888_v51 = vsel %vm345_vm8, %v881_v49, %v883_v47  ;;  %v4977_v52 = vunpack.i.h.bf16 %v4975_v50  ;;  %v4976_v53 = vunpack.i.l.bf16 %v4975_v50 }
  0xf8   : > { %911 = vmatpush1.msra.mxu0 %v888_v51 }
  0xf9   : > { %2961 = vmatmul.mubr.msk.f32.vlgmr.msra.gmra.mrb[4].mxu0 %vm357_vm9, %v5386_v55  ;;  %v1059_v17 = vsel %vm240_vm1, %v4976_v53, %v4977_v52 }
  0xfa   : > { %v4985_v54 = vpop.permute.xlu1 %4984  ;;  %v4980_v56 = vpop.permute.xlu0 %4979  ;;  %v4213_v57 = vpack.c.bf16 %v1059_v17, %v5296_v20  ;;  %1226 = vmatprep.mubr.f32.mxu0 %v5107_v12 }
  0xfb   : > { %v4987_v58 = vunpack.i.h.bf16 %v4985_v54  ;;  %v4986_v24 = vunpack.i.l.bf16 %v4985_v54  ;;  %v4981_v59 = vunpack.i.l.bf16 %v4980_v56  ;;  %v4982_v60 = vunpack.i.h.bf16 %v4980_v56 }
  0xfc   : > { %4214 = vmatprep.subr.bf16.mxu0 %v4213_v57 }
  0xfd   : > { %v1058_v61 = vsel %vm240_vm1, %v4981_v59, %v4976_v53  ;;  %v1073_v3 = vsel %vm255_vm2, %v4986_v24, %v4987_v58  ;;  %v1060_v20 = vsel %vm240_vm1, %v4977_v52, %v4982_v60 }
  0xfe   : > { %v4215_v15 = vpack.c.bf16 %v1058_v61, %v5310_v23  ;;  %v4995_v62 = vpop.permute.xlu1 %4994  ;;  %v4990_v63 = vpop.permute.xlu0 %4989  ;;  %v4230_v18 = vpack.c.bf16 %v1060_v20, %v5299_v21 }
  0xff   : > { %v4992_v1 = vunpack.i.h.bf16 %v4990_v63  ;;  %v4991_v2 = vunpack.i.l.bf16 %v4990_v63  ;;  %v4996_v4 = vunpack.i.l.bf16 %v4995_v62  ;;  %v4997_v13 = vunpack.i.h.bf16 %v4995_v62 }
 0x100   : > { %4216 = vmatpush1.bf16.msra.mxu0 %v4215_v15 }
 0x101   : > { %v1087_v5 = vsel %vm270_vm3, %v4991_v2, %v4992_v1  ;;  %v1072_v19 = vsel %vm255_vm2, %v4996_v4, %v4986_v24  ;;  %v1074_v21 = vsel %vm255_vm2, %v4987_v58, %v4997_v13  ;;  %v1310_v13 = vld [vmem:[%s6830_s3] sm:$0xff] }
 0x102   : > { %v887_v6 = vpop.permute.xlu1 %886  ;;  %v5000_v9 = vpop.permute.xlu0 %4999  ;;  %v4217_v11 = vpack.c.bf16 %v1087_v5, %v1073_v3 }
 0x103   : > { %v890_v16 = vsel %vm345_vm8, %v885_v46, %v887_v6  ;;  %v5002_v7 = vunpack.i.h.bf16 %v5000_v9  ;;  %v5001_v23 = vunpack.i.l.bf16 %v5000_v9  ;;  %v1326_v6 = vld [vmem:[%s6830_s3 + $0x80] sm:$0xff]  ;;  %v1327_v9 = vld [vmem:[%s6830_s3 + $0x88] sm:$0xff] }
 0x104   : > { %3824 = vmatpush3.msra.mxu1 %v890_v16  ;;  %4218 = vmatprep.subr.bf16.mxu0 %v4217_v11  ;;  %v4241_v11 = vpack.c.bf16 %v1327_v9, %v1326_v6  ;;  %v1352_v6 = vld [vmem:[%s6830_s3 + $0x150] sm:$0xff] }
 0x105   : > { %v1086_v22 = vsel %vm270_vm3, %v5001_v23, %v4991_v2  ;;  %v1088_v25 = vsel %vm270_vm3, %v4992_v1, %v5002_v7  ;;  %3826 = vmatmul.mubr.msk.f32.vlgmr.msra.gmra.mrb[4].mxu1 %vm357_vm9, %v5386_v55  ;;  %4229 = vmatprep.subr.bf16.mxu1 %v5098_v0  ;;  %v1328_v7 = vld [vmem:[%s6830_s3 + $0x90] sm:$0xff]  ;;  %v1329_v23 = vld [vmem:[%s6830_s3 + $0x98] sm:$0xff] }
 0x106   : > { %v4219_v26 = vpack.c.bf16 %v1086_v22, %v1072_v19  ;;  %v5010_v27 = vpop.permute.xlu1 %5009  ;;  %4231 = vmatpush3.bf16.msra.mxu1 %v4230_v18  ;;  %3846 = vmatprep.mubr.msk.f32.mxu1 %vm5108_vm0, %v5107_v12  ;;  %v4233_v30 = vpack.c.bf16 %v1088_v25, %v1074_v21  ;;  %v4245_v18 = vpack.c.bf16 %v1329_v23, %v1328_v7  ;;  %v1312_v19 = vld [vmem:[%s6830_s3 + $0x10] sm:$0xff]  ;;  %v1313_v22 = vld [vmem:[%s6830_s3 + $0x18] sm:$0xff]  ;;  %v1314_v21 = vld [vmem:[%s6830_s3 + $0x20] sm:$0xff] }
 0x107   : > { %v5012_v28 = vunpack.i.h.bf16 %v5010_v27  ;;  %v5011_v29 = vunpack.i.l.bf16 %v5010_v27  ;;  %v5005_v10 = vpop.permute.xlu0 %5004  ;;  %4232 = vmatprep.subr.bf16.mxu1 %v5098_v0  ;;  %v4247_v25 = vpack.c.bf16 %v1313_v22, %v1312_v19  ;;  %v1331_v27 = vld [vmem:[%s6830_s3 + $0xa8] sm:$0xff]  ;;  %v1354_v23 = vld [vmem:[%s6830_s3 + $0x160] sm:$0xff]  ;;  %v1356_v22 = vld [vmem:[%s6830_s3 + $0x170] sm:$0xff] }
 0x108   : > { %v5007_v31 = vunpack.i.h.bf16 %v5005_v10  ;;  %v5006_v32 = vunpack.i.l.bf16 %v5005_v10  ;;  %4220 = vmatpush1.bf16.msra.mxu0 %v4219_v26  ;;  %v1330_v26 = vld [vmem:[%s6830_s3 + $0xa0] sm:$0xff] }
 0x109   : > { %v1115_v33 = vsel %vm300_vm5, %v5011_v29, %v5012_v28  ;;  %v1342_v10 = vld [vmem:[%s6830_s3 + $0x100] sm:$0xff] }
 0x10a   : > { %v5020_v34 = vpop.permute.xlu1 %5019  ;;  %4234 = vmatpush3.bf16.msra.mxu1 %v4233_v30  ;;  %v1101_v35 = vsel %vm285_vm4, %v5006_v32, %v5007_v31  ;;  %v1343_v30 = vld [vmem:[%s6830_s3 + $0x108] sm:$0xff] }
 0x10b   : > { %v5022_v36 = vunpack.i.h.bf16 %v5020_v34  ;;  %v5021_v37 = vunpack.i.l.bf16 %v5020_v34  ;;  %v5015_v8 = vpop.permute.xlu0 %5014  ;;  %v4221_v38 = vpack.c.bf16 %v1115_v33, %v1101_v35  ;;  %4235 = vmatprep.subr.bf16.mxu1 %v5098_v0  ;;  %v1332_v33 = vld [vmem:[%s6830_s3 + $0xb0] sm:$0xff]  ;;  %v1333_v34 = vld [vmem:[%s6830_s3 + $0xb8] sm:$0xff] }
 0x10c   : > { %v5017_v39 = vunpack.i.h.bf16 %v5015_v8  ;;  %v5016_v40 = vunpack.i.l.bf16 %v5015_v8  ;;  %v1316_v35 = vld [vmem:[%s6830_s3 + $0x30] sm:$0xff] }
 0x10d   : > { %v1114_v41 = vsel %vm300_vm5, %v5021_v37, %v5011_v29  ;;  %v1116_v42 = vsel %vm300_vm5, %v5012_v28, %v5022_v36  ;;  %4222 = vmatprep.subr.bf16.mxu0 %v4221_v38  ;;  %v4249_v28 = vpack.c.bf16 %v1331_v27, %v1330_v26  ;;  %v1315_v29 = vld [vmem:[%s6830_s3 + $0x28] sm:$0xff]  ;;  %v4253_v36 = vpack.c.bf16 %v1333_v34, %v1332_v33  ;;  %v1317_v37 = vld [vmem:[%s6830_s3 + $0x38] sm:$0xff]  ;;  %v1344_v8 = vld [vmem:[%s6830_s3 + $0x110] sm:$0xff] }
 0x10e   : > { %v1100_v43 = vsel %vm285_vm4, %v5016_v40, %v5006_v32  ;;  %v1102_v44 = vsel %vm285_vm4, %v5007_v31, %v5017_v39  ;;  %v5030_v45 = vpop.permute.xlu1 %5029  ;;  %v4251_v31 = vpack.c.bf16 %v1315_v29, %v1314_v21  ;;  %v4274_v32 = vpack.c.bf16 %v1343_v30, %v1342_v10  ;;  %v1345_v38 = vld [vmem:[%s6830_s3 + $0x118] sm:$0xff]  ;;  %v1334_v40 = vld [vmem:[%s6830_s3 + $0xc0] sm:$0xff] }
 0x10f   : > { %v4223_v14 = vpack.c.bf16 %v1114_v41, %v1100_v43  ;;  %v4236_v46 = vpack.c.bf16 %v1116_v42, %v1102_v44  ;;  %v5032_v47 = vunpack.i.h.bf16 %v5030_v45  ;;  %v5031_v48 = vunpack.i.l.bf16 %v5030_v45  ;;  %v5025_v49 = vpop.permute.xlu0 %5024  ;;  %v1335_v41 = vld [vmem:[%s6830_s3 + $0xc8] sm:$0xff]  ;;  %v1346_v42 = vld [vmem:[%s6830_s3 + $0x120] sm:$0xff] }
 0x110   : > { %v5027_v50 = vunpack.i.h.bf16 %v5025_v49  ;;  %v5026_v51 = vunpack.i.l.bf16 %v5025_v49  ;;  %v4277_v39 = vpack.c.bf16 %v1345_v38, %v1344_v8  ;;  %v1347_v43 = vld [vmem:[%s6830_s3 + $0x128] sm:$0xff]  ;;  %v4255_v44 = vpack.c.bf16 %v1317_v37, %v1316_v35  ;;  %v1337_v49 = vld [vmem:[%s6830_s3 + $0xd8] sm:$0xff] }
 0x111   : > { %4224 = vmatpush1.bf16.msra.mxu0 %v4223_v14  ;;  %4237 = vmatpush3.bf16.msra.mxu1 %v4236_v46  ;;  %v1143_v52 = vsel %vm330_vm7, %v5031_v48, %v5032_v47  ;;  %v4257_v45 = vpack.c.bf16 %v1335_v41, %v1334_v40  ;;  %v1318_v14 = vld [vmem:[%s6830_s3 + $0x40] sm:$0xff]  ;;  %v1319_v46 = vld [vmem:[%s6830_s3 + $0x48] sm:$0xff] }
 0x112   : > { %v1135_v53 = vpop.permute.xlu1 %1134  ;;  %v1129_v17 = vsel %vm315_vm6, %v5026_v51, %v5027_v50  ;;  %4238 = vmatprep.subr.bf16.mxu1 %v5098_v0 }
 0x113   : > { %v1142_v54 = vsel %vm330_vm7, %v1135_v53, %v5031_v48  ;;  %v1121_v56 = vpop.permute.xlu0 %1120  ;;  %v4225_v57 = vpack.c.bf16 %v1143_v52, %v1129_v17  ;;  %v1336_v48 = vld [vmem:[%s6830_s3 + $0xd0] sm:$0xff]  ;;  %v4259_v52 = vpack.c.bf16 %v1319_v46, %v1318_v14 }
 0x114   : > { %v1128_v58 = vsel %vm315_vm6, %v1121_v56, %v5026_v51  ;;  %v1349_v51 = vld [vmem:[%s6830_s3 + $0x138] sm:$0xff]  ;;  %v4261_v53 = vpack.c.bf16 %v1337_v49, %v1336_v48  ;;  %v1320_v17 = vld [vmem:[%s6830_s3 + $0x50] sm:$0xff] }
 0x115   : > { %v4227_v24 = vpack.c.bf16 %v1142_v54, %v1128_v58  ;;  %4226 = vmatprep.subr.bf16.mxu0 %v4225_v57  ;;  %v1321_v54 = vld [vmem:[%s6830_s3 + $0x58] sm:$0xff]  ;;  %v1338_v58 = vld [vmem:[%s6830_s3 + $0xe0] sm:$0xff] }
 0x116   : > { %v1153_v59 = vpop.permute.xlu1 %1152  ;;  %v4263_v57 = vpack.c.bf16 %v1321_v54, %v1320_v17 }
 0x117   : > { %v1151_v60 = vpop.permute.xlu0 %1150  ;;  %4228 = vmatpush1.bf16.msra.mxu0 %v4227_v24  ;;  %v1339_v24 = vld [vmem:[%s6830_s3 + $0xe8] sm:$0xff] }
 0x118   : > { %v1157_v61 = vsel %vm345_vm8, %v1151_v60, %v1153_v59 }
 0x119   : > { %1178 = vmatprep.subr.mxu0 %v1157_v61  ;;  %v1323_v61 = vld [vmem:[%s6830_s3 + $0x68] sm:$0xff] }
 0x11a   : > { %v1127_v63 = vpop.permute.xlu1 %1126 }
 0x11b   : > { %v1149_v15 = vpop.permute.xlu0 %1148  ;;  %v1130_v2 = vsel %vm315_vm6, %v5027_v50, %v1127_v63  ;;  %v1348_v50 = vld [vmem:[%s6830_s3 + $0x130] sm:$0xff]  ;;  %v1351_v63 = vld [vmem:[%s6830_s3 + $0x148] sm:$0xff] }
 0x11c   : > { %v1156_v62 = vsel %vm345_vm8, %v1149_v15, %v1151_v60  ;;  %v4283_v56 = vpack.c.bf16 %v1349_v51, %v1348_v50  ;;  %v1322_v60 = vld [vmem:[%s6830_s3 + $0x60] sm:$0xff] }
 0x11d   : > { %1179 = vmatpush1.msra.mxu0 %v1156_v62  ;;  %v1350_v15 = vld [vmem:[%s6830_s3 + $0x140] sm:$0xff]  ;;  %v4267_v62 = vpack.c.bf16 %v1323_v61, %v1322_v60 }
 0x11e   : > { %2967 = vmatmul.mubr.msk.f32.vlgmr.msra.gmra.mrb[6].mxu0 %vm357_vm9, %v5386_v55  ;;  %v1155_v4 = vpop.permute.xlu1 %1154  ;;  %4242 = vmatprep.subr.bf16.mxu0 %v4241_v11  ;;  %v1353_v11 = vld [vmem:[%s6830_s3 + $0x158] sm:$0xff] }
 0x11f   : > { %v1141_v1 = vpop.permute.xlu0 %1140  ;;  %v1158_v5 = vsel %vm345_vm8, %v1153_v59, %v1155_v4  ;;  %v4265_v59 = vpack.c.bf16 %v1339_v24, %v1338_v58  ;;  %v1324_v4 = vld [vmem:[%s6830_s3 + $0x70] sm:$0xff] }
 0x120   : > { %v1144_v3 = vsel %vm330_vm7, %v5032_v47, %v1141_v1  ;;  %v4280_v47 = vpack.c.bf16 %v1347_v43, %v1346_v42  ;;  %v4286_v1 = vpack.c.bf16 %v1351_v63, %v1350_v15  ;;  %v2969_v63 = vld [vmem:[%s6830_s3 + $0x180] sm:$0xff] }
 0x121   : > { %v4239_v20 = vpack.c.bf16 %v1144_v3, %v1130_v2  ;;  %v1340_v2 = vld [vmem:[%s6830_s3 + $0xf0] sm:$0xff]  ;;  %v1341_v3 = vld [vmem:[%s6830_s3 + $0xf8] sm:$0xff] }
 0x123   : > { %4240 = vmatpush3.bf16.msra.mxu1 %v4239_v20  ;;  %v4269_v20 = vpack.c.bf16 %v1341_v3, %v1340_v2  ;;  %v2987_v3 = vld [vmem:[%s6830_s3 + $0x210] sm:$0xff] }
 0x124   : > { %3844 = vmatprep.subr.mxu1 %v5107_v12 }
 0x127   : > { %3845 = vmatpush3.msra.mxu1 %v1158_v5  ;;  %v1325_v5 = vld [vmem:[%s6830_s3 + $0x78] sm:$0xff] }
 0x128   : > { %3847 = vmatmul.mubr.msk.f32.vlgmr.msra.gmra.mrb[6].mxu1 %vm357_vm9, %v5386_v55  ;;  %4273 = vmatprep.subr.bf16.mxu1 %v5098_v0  ;;  %v1311_v55 = vld [vmem:[%s6830_s3 + $0x8] sm:$0xff]  ;;  %v4271_v9 = vpack.c.bf16 %v1325_v5, %v1324_v4 }
 0x129   : > { %3881 = vmatprep.mubr.msk.f32.mxu1 %vm5108_vm0, %v5107_v12  ;;  %v4243_v16 = vpack.c.bf16 %v1311_v55, %v1310_v13  ;;  %4275 = vmatpush3.bf16.msra.mxu1 %v4274_v32  ;;  %v4289_v13 = vpack.c.bf16 %v1353_v11, %v1352_v6  ;;  %v2985_v55 = vld [vmem:[%s6830_s3 + $0x200] sm:$0xff]  ;;  %v2971_v11 = vld [vmem:[%s6830_s3 + $0x190] sm:$0xff] }
 0x12a   : > { %4276 = vmatprep.subr.bf16.mxu1 %v5098_v0 }
 0x12b   : > { %4244 = vmatpush3.bf16.msra.mxu0 %v4243_v16  ;;  %v2986_v16 = vld [vmem:[%s6830_s3 + $0x208] sm:$0xff] }
 0x12c   : > { %4246 = vmatprep.subr.bf16.mxu0 %v4245_v18  ;;  %v4297_v7 = vpack.c.bf16 %v2986_v16, %v2985_v55  ;;  %v1355_v18 = vld [vmem:[%s6830_s3 + $0x168] sm:$0xff]  ;;  %v2989_v16 = vld [vmem:[%s6830_s3 + $0x220] sm:$0xff] }
 0x12d   : > { %4278 = vmatpush3.bf16.msra.mxu1 %v4277_v39  ;;  %v4292_v19 = vpack.c.bf16 %v1355_v18, %v1354_v23 }
 0x12e   : > { %4279 = vmatprep.subr.bf16.mxu1 %v5098_v0 }
 0x12f   : > { %4248 = vmatpush3.bf16.msra.mxu0 %v4247_v25  ;;  %v1357_v25 = vld [vmem:[%s6830_s3 + $0x178] sm:$0xff] }
 0x130   : > { %4250 = vmatprep.subr.bf16.mxu0 %v4249_v28  ;;  %v4295_v26 = vpack.c.bf16 %v1357_v25, %v1356_v22  ;;  %v355_v10 = vpop.permute.xlu0 %354 }
 0x131   : > { %4281 = vmatpush3.bf16.msra.mxu1 %v4280_v47 }
 0x132   : > { %4282 = vmatprep.subr.bf16.mxu1 %v5098_v0 }
 0x133   : > { %4252 = vmatpush3.bf16.msra.mxu0 %v4251_v31 }
 0x134   : > { %4254 = vmatprep.subr.bf16.mxu0 %v4253_v36 }
 0x135   : > { %4284 = vmatpush3.bf16.msra.mxu1 %v4283_v56 }
 0x136   : > { %4285 = vmatprep.subr.bf16.mxu1 %v5098_v0 }
 0x137   : > { %4256 = vmatpush3.bf16.msra.mxu0 %v4255_v44 }
 0x138   : > { %4258 = vmatprep.subr.bf16.mxu0 %v4257_v45 }
 0x139   : > { %4287 = vmatpush3.bf16.msra.mxu1 %v4286_v1  ;;  %v2970_v1 = vld [vmem:[%s6830_s3 + $0x188] sm:$0xff] }
 0x13a   : > { %4288 = vmatprep.subr.bf16.mxu1 %v5098_v0  ;;  %v4299_v6 = vpack.c.bf16 %v2970_v1, %v2969_v63  ;;  %v3000_v63 = vld [vmem:[%s6830_s3 + $0x278] sm:$0xff] }
 0x13b   : > { %4260 = vmatpush3.bf16.msra.mxu0 %v4259_v52 }
 0x13c   : > { %4262 = vmatprep.subr.bf16.mxu0 %v4261_v53 }
 0x13d   : > { %4290 = vmatpush3.bf16.msra.mxu1 %v4289_v13  ;;  %v2972_v13 = vld [vmem:[%s6830_s3 + $0x198] sm:$0xff] }
 0x13e   : > { %4291 = vmatprep.subr.bf16.mxu1 %v5098_v0  ;;  %v4303_v18 = vpack.c.bf16 %v2972_v13, %v2971_v11  ;;  %v3012_v11 = vld [vmem:[%s6830_s3 + $0x2d8] sm:$0xff]  ;;  %v3033_v13 = vld [vmem:[%s6830_s3 + $0x380] sm:$0xff] }
 0x13f   : > { %4264 = vmatpush3.bf16.msra.mxu0 %v4263_v57 }
 0x140   : > { %4266 = vmatprep.subr.bf16.mxu0 %v4265_v59 }
 0x141   : > { %4293 = vmatpush3.bf16.msra.mxu1 %v4292_v19  ;;  %v2973_v19 = vld [vmem:[%s6830_s3 + $0x1a0] sm:$0xff] }
 0x142   : > { %4294 = vmatprep.subr.bf16.mxu1 %v5098_v0 }
 0x143   : > { %4268 = vmatpush3.bf16.msra.mxu0 %v4267_v62 }
 0x144   : > { %4270 = vmatprep.subr.bf16.mxu0 %v4269_v20  ;;  %v2988_v20 = vld [vmem:[%s6830_s3 + $0x218] sm:$0xff] }
 0x145   : > { %4296 = vmatpush3.bf16.msra.mxu1 %v4295_v26 }
 0x146   : > { %4329 = vmatprep.subr.bf16.mxu1 %v5098_v0 }
 0x147   : > { %4272 = vmatpush3.bf16.msra.mxu0 %v4271_v9  ;;  %v4301_v9 = vpack.c.bf16 %v2988_v20, %v2987_v3  ;;  %v2983_v3 = vld [vmem:[%s6830_s3 + $0x1f0] sm:$0xff] }
 0x148   : > { %4298 = vmatprep.subr.bf16.mxu0 %v4297_v7  ;;  %v2990_v7 = vld [vmem:[%s6830_s3 + $0x228] sm:$0xff] }
 0x149   : > { %v4305_v26 = vpack.c.bf16 %v2990_v7, %v2989_v16 }
 0x184   : > { %v427_v27 = vpop.f32.mrb[0].mxu0 }
 0x185   : > { %v429_v21 = vpop.f32.mrb[1].mxu0  ;;  %v428_v30 = vadd.f32 %v427_v27, %v355_v10  ;;  %v2974_v27 = vld [vmem:[%s6830_s3 + $0x1a8] sm:$0xff] }
 0x186   : > { %v430_v31 = vadd.f32 %v429_v21, %v355_v10  ;;  %v3001_v21 = vld [vmem:[%s6830_s3 + $0x280] sm:$0xff] }
 0x187   : > { %v502_v34 = vmax.f32 %v428_v30, 0.0 }
 0x188   : > { %v503_v36 = vmax.f32 %v430_v31, 0.0  ;;  %v4307_v31 = vpack.c.bf16 %v2974_v27, %v2973_v19  ;;  %v3014_v19 = vld [vmem:[%s6830_s3 + $0x2e8] sm:$0xff]  ;;  %v3036_v27 = vld [vmem:[%s6830_s3 + $0x398] sm:$0xff] }
 0x190   : > { %v498_v28 = vpop.f32.mrb[0].mxu1 }
 0x191   : > { %v3785_v29 = vpop.f32.mrb[1].mxu1  ;;  %v499_v41 = vadd.f32 %v498_v28, %v355_v10  ;;  %v3002_v28 = vld [vmem:[%s6830_s3 + $0x288] sm:$0xff] }
 0x192   : > { %v2991_v29 = vld [vmem:[%s6830_s3 + $0x230] sm:$0xff] }
 0x193   : > { %v504_v43 = vmax.f32 %v499_v41, 0.0 }
 0x1a8   : > { %v692_v32 = vpop.f32.mrb[2].mxu0 }
 0x1a9   : > { %v694_v33 = vpop.f32.mrb[3].mxu0  ;;  %v693_v35 = vadd.f32 %v692_v32, %v355_v10  ;;  %v4330_v32 = vpack.c.bf16 %v3002_v28, %v3001_v21 }
 0x1aa   : > { %v695_v37 = vadd.f32 %v694_v33, %v355_v10  ;;  %v2975_v33 = vld [vmem:[%s6830_s3 + $0x1b0] sm:$0xff] }
 0x1ab   : > { %v767_v8 = vmax.f32 %v693_v35, 0.0 }
 0x1ac   : > { %v768_v38 = vmax.f32 %v695_v37, 0.0  ;;  %v3003_v37 = vld [vmem:[%s6830_s3 + $0x290] sm:$0xff] }
 0x1ad   : > { %v770_v39 = vmax.f32 %v502_v34, %v767_v8  ;;  %v3004_v8 = vld [vmem:[%s6830_s3 + $0x298] sm:$0xff] }
 0x1ae   : > { %v771_v40 = vmax.f32 %v503_v36, %v768_v38  ;;  %v2976_v36 = vld [vmem:[%s6830_s3 + $0x1b8] sm:$0xff]  ;;  %v2993_v38 = vld [vmem:[%s6830_s3 + $0x240] sm:$0xff]  ;;  %v4333_v41 = vpack.c.bf16 %v3004_v8, %v3003_v37 }
 0x1b4   : > { %v763_v42 = vpop.f32.mrb[2].mxu1 }
 0x1b5   : > { %v764_v44 = vadd.f32 %v763_v42, %v355_v10  ;;  %v3806_v45 = vpop.f32.mrb[3].mxu1  ;;  %v2977_v42 = vld [vmem:[%s6830_s3 + $0x1c0] sm:$0xff] }
 0x1b6   : > { %v3005_v45 = vld [vmem:[%s6830_s3 + $0x2a0] sm:$0xff] }
 0x1b7   : > { %v769_v14 = vmax.f32 %v764_v44, 0.0  ;;  %v2978_v44 = vld [vmem:[%s6830_s3 + $0x1c8] sm:$0xff] }
 0x1b9   : > { %v772_v46 = vmax.f32 %v504_v43, %v769_v14  ;;  %v3006_v14 = vld [vmem:[%s6830_s3 + $0x2a8] sm:$0xff] }
 0x1cc   : > { %v960_v47 = vpop.f32.mrb[4].mxu0 }
 0x1cd   : > { %v961_v48 = vadd.f32 %v960_v47, %v355_v10  ;;  %v962_v49 = vpop.f32.mrb[5].mxu0  ;;  %v2996_v47 = vld [vmem:[%s6830_s3 + $0x258] sm:$0xff] }
 0x1ce   : > { %v963_v50 = vadd.f32 %v962_v49, %v355_v10  ;;  %v4336_v49 = vpack.c.bf16 %v3006_v14, %v3005_v45  ;;  %v3040_v45 = vld [vmem:[%s6830_s3 + $0x3b8] sm:$0xff] }
 0x1cf   : > { %v1035_v51 = vmax.f32 %v961_v48, 0.0  ;;  %v4315_v48 = vpack.c.bf16 %v2978_v44, %v2977_v42  ;;  %v3049_v42 = vld [vmem:[%s6830_s3 + $0x400] sm:$0xff]  ;;  %v3039_v44 = vld [vmem:[%s6830_s3 + $0x3b0] sm:$0xff] }
 0x1d0   : > { %v1036_v52 = vmax.f32 %v963_v50, 0.0  ;;  %v2979_v50 = vld [vmem:[%s6830_s3 + $0x1d0] sm:$0xff] }
 0x1d1   : > { %v1038_v53 = vmax.f32 %v770_v39, %v1035_v51  ;;  %v2994_v39 = vld [vmem:[%s6830_s3 + $0x248] sm:$0xff] }
 0x1d2   : > { %v1039_v17 = vmax.f32 %v771_v40, %v1036_v52  ;;  %v4311_v40 = vpack.c.bf16 %v2976_v36, %v2975_v33  ;;  %v4313_v43 = vpack.c.bf16 %v2994_v39, %v2993_v38  ;;  %v2980_v52 = vld [vmem:[%s6830_s3 + $0x1d8] sm:$0xff]  ;;  %v3038_v36 = vld [vmem:[%s6830_s3 + $0x3a8] sm:$0xff]  ;;  %v3021_v39 = vld [vmem:[%s6830_s3 + $0x320] sm:$0xff] }
 0x1d8   : > { %v1031_v54 = vpop.f32.mrb[4].mxu1 }
 0x1d9   : > { %v1032_v56 = vadd.f32 %v1031_v54, %v355_v10  ;;  %v3827_v57 = vpop.f32.mrb[5].mxu1  ;;  %v2997_v54 = vld [vmem:[%s6830_s3 + $0x260] sm:$0xff] }
 0x1da   : > { %v4319_v57 = vpack.c.bf16 %v2980_v52, %v2979_v50  ;;  %v3024_v50 = vld [vmem:[%s6830_s3 + $0x338] sm:$0xff] }
 0x1db   : > { %v1037_v58 = vmax.f32 %v1032_v56, 0.0  ;;  %v2998_v56 = vld [vmem:[%s6830_s3 + $0x268] sm:$0xff]  ;;  %v3052_v52 = vld [vmem:[%s6830_s3 + $0x418] sm:$0xff] }
 0x1dd   : > { %v1040_v24 = vmax.f32 %v772_v46, %v1037_v58  ;;  %v2995_v46 = vld [vmem:[%s6830_s3 + $0x250] sm:$0xff] }
 0x1de   : > { %v4317_v51 = vpack.c.bf16 %v2996_v47, %v2995_v46  ;;  %v3023_v47 = vld [vmem:[%s6830_s3 + $0x330] sm:$0xff] }
 0x1f1   : > { %v1228_v59 = vpop.f32.mrb[6].mxu0 }
 0x1f2   : > { %v1229_v60 = vadd.f32 %v1228_v59, %v355_v10  ;;  %v1230_v61 = vpop.f32.mrb[7].mxu0  ;;  %v4321_v59 = vpack.c.bf16 %v2998_v56, %v2997_v54  ;;  %v4367_v54 = vpack.c.bf16 %v3024_v50, %v3023_v47  ;;  %v3068_v47 = vld [vmem:[%s6830_s3 + $0x498] sm:$0xff]  ;;  %v3086_v50 = vld [vmem:[%s6830_s3 + $0x528] sm:$0xff] }
 0x1f3   : > { %v1231_v15 = vadd.f32 %v1230_v61, %v355_v10  ;;  %v3009_v61 = vld [vmem:[%s6830_s3 + $0x2c0] sm:$0xff] }
 0x1f4   : > { %v1303_v62 = vmax.f32 %v1229_v60, 0.0  ;;  %v2982_v60 = vld [vmem:[%s6830_s3 + $0x1e8] sm:$0xff] }
 0x1f5   : > { %v1304_v2 = vmax.f32 %v1231_v15, 0.0  ;;  %v3010_v15 = vld [vmem:[%s6830_s3 + $0x2c8] sm:$0xff] }
 0x1f6   : > { %v5688_v4 = vmax.f32 %v1038_v53, %v1303_v62  ;;  %v3007_v53 = vld [vmem:[%s6830_s3 + $0x2b0] sm:$0xff] }
 0x1f7   : > { %v5690_v5 = vmax.f32 %v1039_v17, %v1304_v2  ;;  %v3008_v17 = vld [vmem:[%s6830_s3 + $0x2b8] sm:$0xff]  ;;  %v2999_v62 = vld [vmem:[%s6830_s3 + $0x270] sm:$0xff]  ;;  %v4342_v2 = vpack.c.bf16 %v3010_v15, %v3009_v61 }
 0x1f8   : > { %v4339_v58 = vpack.c.bf16 %v3008_v17, %v3007_v53  ;;  %v4325_v20 = vpack.c.bf16 %v3000_v63, %v2999_v62  ;;  %v3041_v53 = vld [vmem:[%s6830_s3 + $0x3c0] sm:$0xff]  ;;  %v3042_v17 = vld [vmem:[%s6830_s3 + $0x3c8] sm:$0xff]  ;;  %v3043_v61 = vld [vmem:[%s6830_s3 + $0x3d0] sm:$0xff] }
 0x1f9   : > { %1422 = vmatprep.mubr.f32.mxu0 %v5690_v5  ;;  %v1552_v55 = vrot.slane %v5690_v5, 1  ;;  %v1748_v37 = vrot.slane %v5690_v5, 2  ;;  %v3044_v15 = vld [vmem:[%s6830_s3 + $0x3d8] sm:$0xff] }
 0x1fa   : > { %1423 = vmatmul.mubr.f32.vlgmr.msra.gmra.mrb[8].mxu0 %v5688_v4 }
 0x1fb   : > { %4300 = vmatpush3.bf16.msra.mxu0 %v4299_v6  ;;  %v1299_v23 = vpop.f32.mrb[6].mxu1  ;;  %1621 = vmatprep.mubr.f32.mxu0 %v1552_v55  ;;  %v2984_v6 = vld [vmem:[%s6830_s3 + $0x1f8] sm:$0xff]  ;;  %v3034_v55 = vld [vmem:[%s6830_s3 + $0x388] sm:$0xff] }
 0x1fc   : > { %v1300_v22 = vadd.f32 %v1299_v23, %v355_v10  ;;  %v3848_v25 = vpop.f32.mrb[7].mxu1  ;;  %4302 = vmatprep.subr.bf16.mxu0 %v4301_v9  ;;  %v2992_v10 = vld [vmem:[%s6830_s3 + $0x238] sm:$0xff]  ;;  %v3011_v9 = vld [vmem:[%s6830_s3 + $0x2d0] sm:$0xff]  ;;  %v4327_v16 = vpack.c.bf16 %v2984_v6, %v2983_v3  ;;  %v3013_v23 = vld [vmem:[%s6830_s3 + $0x2e0] sm:$0xff] }
 0x1fd   : > { %v4309_v35 = vpack.c.bf16 %v2992_v10, %v2991_v29  ;;  %v4345_v7 = vpack.c.bf16 %v3012_v11, %v3011_v9  ;;  %v3018_v25 = vld [vmem:[%s6830_s3 + $0x308] sm:$0xff]  ;;  %v4348_v21 = vpack.c.bf16 %v3014_v19, %v3013_v23  ;;  %v3015_v29 = vld [vmem:[%s6830_s3 + $0x2f0] sm:$0xff]  ;;  %v1551_v10 = vrot.slane %v5688_v4, 1  ;;  %v3028_v3 = vld [vmem:[%s6830_s3 + $0x358] sm:$0xff] }
 0x1fe   : > { %v1305_v30 = vmax.f32 %v1300_v22, 0.0  ;;  %v3017_v22 = vld [vmem:[%s6830_s3 + $0x300] sm:$0xff]  ;;  %v3056_v6 = vld [vmem:[%s6830_s3 + $0x438] sm:$0xff]  ;;  %v3046_v11 = vld [vmem:[%s6830_s3 + $0x3e8] sm:$0xff] }
 0x1ff   : > { %4304 = vmatpush3.bf16.msra.mxu0 %v4303_v18  ;;  %v4353_v18 = vpack.c.bf16 %v3034_v55, %v3033_v13  ;;  %v4355_v28 = vpack.c.bf16 %v3018_v25, %v3017_v22  ;;  %v3045_v9 = vld [vmem:[%s6830_s3 + $0x3e0] sm:$0xff]  ;;  %v3030_v23 = vld [vmem:[%s6830_s3 + $0x368] sm:$0xff]  ;;  %v3047_v22 = vld [vmem:[%s6830_s3 + $0x3f0] sm:$0xff] }
 0x200   : > { %v5728_v34 = vmax.f32 %v1040_v24, %v1305_v30  ;;  %4306 = vmatprep.subr.bf16.mxu0 %v4305_v26  ;;  %v2981_v24 = vld [vmem:[%s6830_s3 + $0x1e0] sm:$0xff]  ;;  %v3035_v26 = vld [vmem:[%s6830_s3 + $0x390] sm:$0xff]  ;;  %v3016_v30 = vld [vmem:[%s6830_s3 + $0x2f8] sm:$0xff] }
 0x201   : > { %v4323_v1 = vpack.c.bf16 %v2982_v60, %v2981_v24  ;;  %v4357_v33 = vpack.c.bf16 %v3036_v27, %v3035_v26  ;;  %v4351_v8 = vpack.c.bf16 %v3016_v30, %v3015_v29  ;;  %v3026_v24 = vld [vmem:[%s6830_s3 + $0x348] sm:$0xff]  ;;  %v3048_v25 = vld [vmem:[%s6830_s3 + $0x3f8] sm:$0xff] }
 0x202   : > { %3882 = vmatmul.mubr.f32.vlgmr.msra.gmra.mrb[8].mxu1 %v5728_v34  ;;  %v3054_v60 = vld [vmem:[%s6830_s3 + $0x428] sm:$0xff]  ;;  %v3032_v29 = vld [vmem:[%s6830_s3 + $0x378] sm:$0xff] }
 0x203   : > { %4308 = vmatpush3.bf16.msra.mxu0 %v4307_v31  ;;  %4331 = vmatpush3.bf16.msra.mxu1 %v4330_v32  ;;  %v3019_v31 = vld [vmem:[%s6830_s3 + $0x310] sm:$0xff]  ;;  %v3020_v32 = vld [vmem:[%s6830_s3 + $0x318] sm:$0xff]  ;;  %v3058_v19 = vld [vmem:[%s6830_s3 + $0x448] sm:$0xff] }
 0x204   : > { %4310 = vmatprep.subr.bf16.mxu0 %v4309_v35  ;;  %4332 = vmatprep.subr.bf16.mxu1 %v5098_v0  ;;  %v3037_v35 = vld [vmem:[%s6830_s3 + $0x3a0] sm:$0xff]  ;;  %v4359_v38 = vpack.c.bf16 %v3020_v32, %v3019_v31  ;;  %v3060_v30 = vld [vmem:[%s6830_s3 + $0x458] sm:$0xff]  ;;  %v3082_v32 = vld [vmem:[%s6830_s3 + $0x508] sm:$0xff] }
 0x205   : > { %3916 = vmatprep.mubr.msk.f32.mxu1 %vm5108_vm0, %v5107_v12  ;;  %v3081_v31 = vld [vmem:[%s6830_s3 + $0x500] sm:$0xff] }
 0x207   : > { %4312 = vmatpush3.bf16.msra.mxu0 %v4311_v40  ;;  %4334 = vmatpush3.bf16.msra.mxu1 %v4333_v41  ;;  %v4361_v40 = vpack.c.bf16 %v3038_v36, %v3037_v35  ;;  %v3022_v41 = vld [vmem:[%s6830_s3 + $0x328] sm:$0xff]  ;;  %v3061_v36 = vld [vmem:[%s6830_s3 + $0x460] sm:$0xff] }
 0x208   : > { %4314 = vmatprep.subr.bf16.mxu0 %v4313_v43  ;;  %4335 = vmatprep.subr.bf16.mxu1 %v5098_v0  ;;  %v3050_v43 = vld [vmem:[%s6830_s3 + $0x408] sm:$0xff]  ;;  %v4363_v14 = vpack.c.bf16 %v3022_v41, %v3021_v39  ;;  %v3084_v41 = vld [vmem:[%s6830_s3 + $0x518] sm:$0xff] }
 0x209   : > { %v4386_v46 = vpack.c.bf16 %v3050_v43, %v3049_v42  ;;  %v3066_v39 = vld [vmem:[%s6830_s3 + $0x488] sm:$0xff] }
 0x20b   : > { %4316 = vmatpush3.bf16.msra.mxu0 %v4315_v48  ;;  %4337 = vmatpush3.bf16.msra.mxu1 %v4336_v49  ;;  %v1553_v48 = vrot.slane %v5728_v34, 1  ;;  %v4365_v49 = vpack.c.bf16 %v3040_v45, %v3039_v44  ;;  %v3063_v44 = vld [vmem:[%s6830_s3 + $0x470] sm:$0xff]  ;;  %v1747_v45 = vrot.slane %v5688_v4, 2 }
 0x20c   : > { %4318 = vmatprep.subr.bf16.mxu0 %v4317_v51  ;;  %4338 = vmatprep.subr.bf16.mxu1 %v5098_v0  ;;  %v3051_v51 = vld [vmem:[%s6830_s3 + $0x410] sm:$0xff] }
 0x20d   : > { %v4389_v56 = vpack.c.bf16 %v3052_v52, %v3051_v51  ;;  %v1944_v51 = vrot.slane %v5690_v5, 3 }
 0x20f   : > { %4320 = vmatpush3.bf16.msra.mxu0 %v4319_v57  ;;  %4340 = vmatpush3.bf16.msra.mxu1 %v4339_v58  ;;  %v3025_v57 = vld [vmem:[%s6830_s3 + $0x340] sm:$0xff]  ;;  %v4369_v58 = vpack.c.bf16 %v3042_v17, %v3041_v53 }
 0x210   : > { %4322 = vmatprep.subr.bf16.mxu0 %v4321_v59  ;;  %4341 = vmatprep.subr.bf16.mxu1 %v5098_v0  ;;  %v3053_v59 = vld [vmem:[%s6830_s3 + $0x420] sm:$0xff]  ;;  %v4371_v62 = vpack.c.bf16 %v3026_v24, %v3025_v57  ;;  %v3087_v24 = vld [vmem:[%s6830_s3 + $0x530] sm:$0xff] }
 0x211   : > { %v4392_v63 = vpack.c.bf16 %v3054_v60, %v3053_v59  ;;  %v3069_v17 = vld [vmem:[%s6830_s3 + $0x4a0] sm:$0xff]  ;;  %v3088_v59 = vld [vmem:[%s6830_s3 + $0x538] sm:$0xff] }
 0x212   : > { %v3097_v57 = vld [vmem:[%s6830_s3 + $0x580] sm:$0xff] }
 0x213   : > { %4324 = vmatpush3.bf16.msra.mxu0 %v4323_v1  ;;  %4343 = vmatpush3.bf16.msra.mxu1 %v4342_v2  ;;  %v3027_v1 = vld [vmem:[%s6830_s3 + $0x350] sm:$0xff]  ;;  %v4373_v2 = vpack.c.bf16 %v3044_v15, %v3043_v61 }
 0x214   : > { %4326 = vmatprep.subr.bf16.mxu0 %v4325_v20  ;;  %4344 = vmatprep.subr.bf16.mxu1 %v5098_v0  ;;  %v3055_v20 = vld [vmem:[%s6830_s3 + $0x430] sm:$0xff]  ;;  %v4375_v13 = vpack.c.bf16 %v3028_v3, %v3027_v1  ;;  %v3072_v1 = vld [vmem:[%s6830_s3 + $0x4b8] sm:$0xff] }
 0x215   : > { %v4395_v55 = vpack.c.bf16 %v3056_v6, %v3055_v20  ;;  %v3071_v15 = vld [vmem:[%s6830_s3 + $0x4b0] sm:$0xff]  ;;  %v3100_v3 = vld [vmem:[%s6830_s3 + $0x598] sm:$0xff]  ;;  %v3089_v20 = vld [vmem:[%s6830_s3 + $0x540] sm:$0xff] }
 0x216   : > { %v3090_v6 = vld [vmem:[%s6830_s3 + $0x548] sm:$0xff] }
 0x217   : > { %4328 = vmatpush3.bf16.msra.mxu0 %v4327_v16  ;;  %4346 = vmatpush3.bf16.msra.mxu1 %v4345_v7  ;;  %v3029_v16 = vld [vmem:[%s6830_s3 + $0x360] sm:$0xff]  ;;  %v4377_v7 = vpack.c.bf16 %v3046_v11, %v3045_v9  ;;  %v4423_v9 = vpack.c.bf16 %v3072_v1, %v3071_v15  ;;  %v3116_v15 = vld [vmem:[%s6830_s3 + $0x618] sm:$0xff]  ;;  %v3134_v1 = vld [vmem:[%s6830_s3 + $0x6a8] sm:$0xff] }
 0x218   : > { %4347 = vmatprep.subr.bf16.mxu1 %v5098_v0  ;;  %4354 = vmatprep.subr.bf16.mxu0 %v4353_v18  ;;  %v3057_v18 = vld [vmem:[%s6830_s3 + $0x440] sm:$0xff]  ;;  %v4379_v26 = vpack.c.bf16 %v3030_v23, %v3029_v16  ;;  %v3074_v16 = vld [vmem:[%s6830_s3 + $0x4c8] sm:$0xff] }
 0x219   : > { %v4398_v27 = vpack.c.bf16 %v3058_v19, %v3057_v18  ;;  %v3102_v23 = vld [vmem:[%s6830_s3 + $0x5a8] sm:$0xff]  ;;  %v3091_v18 = vld [vmem:[%s6830_s3 + $0x550] sm:$0xff]  ;;  %v3092_v19 = vld [vmem:[%s6830_s3 + $0x558] sm:$0xff] }
 0x21a   : > { %1622 = vmatmul.mubr.f32.vlgmr.msra.gmra.mrb[10].mxu0 %v1551_v10  ;;  %v3059_v10 = vld [vmem:[%s6830_s3 + $0x450] sm:$0xff] }
 0x21b   : > { %4349 = vmatpush3.bf16.msra.mxu1 %v4348_v21  ;;  %4356 = vmatpush3.bf16.msra.mxu0 %v4355_v28  ;;  %v3031_v21 = vld [vmem:[%s6830_s3 + $0x370] sm:$0xff]  ;;  %v4381_v28 = vpack.c.bf16 %v3048_v25, %v3047_v22  ;;  %v4401_v35 = vpack.c.bf16 %v3060_v30, %v3059_v10  ;;  %v3093_v10 = vld [vmem:[%s6830_s3 + $0x560] sm:$0xff]  ;;  %v3094_v30 = vld [vmem:[%s6830_s3 + $0x568] sm:$0xff] }
 0x21c   : > { %1817 = vmatprep.mubr.f32.mxu0 %v1748_v37  ;;  %4350 = vmatprep.subr.bf16.mxu1 %v5098_v0  ;;  %v4409_v37 = vpack.c.bf16 %v3082_v32, %v3081_v31 }
 0x21d   : > { %4358 = vmatprep.subr.bf16.mxu0 %v4357_v33  ;;  %v4383_v33 = vpack.c.bf16 %v3032_v29, %v3031_v21  ;;  %v3076_v21 = vld [vmem:[%s6830_s3 + $0x4d8] sm:$0xff] }
 0x21e   : > { %v3104_v29 = vld [vmem:[%s6830_s3 + $0x5b8] sm:$0xff] }
 0x21f   : > { %4352 = vmatpush3.bf16.msra.mxu1 %v4351_v8  ;;  %4360 = vmatpush3.bf16.msra.mxu0 %v4359_v38  ;;  %v3062_v8 = vld [vmem:[%s6830_s3 + $0x468] sm:$0xff]  ;;  %v3065_v38 = vld [vmem:[%s6830_s3 + $0x480] sm:$0xff] }
 0x220   : > { %4362 = vmatprep.subr.bf16.mxu0 %v4361_v40  ;;  %4385 = vmatprep.subr.bf16.mxu1 %v5098_v0  ;;  %v3083_v40 = vld [vmem:[%s6830_s3 + $0x510] sm:$0xff]  ;;  %v4404_v42 = vpack.c.bf16 %v3062_v8, %v3061_v36  ;;  %v4411_v43 = vpack.c.bf16 %v3066_v39, %v3065_v38  ;;  %v3078_v36 = vld [vmem:[%s6830_s3 + $0x4e8] sm:$0xff]  ;;  %v3096_v39 = vld [vmem:[%s6830_s3 + $0x578] sm:$0xff] }
 0x221   : > { %v3106_v8 = vld [vmem:[%s6830_s3 + $0x5c8] sm:$0xff]  ;;  %v3095_v38 = vld [vmem:[%s6830_s3 + $0x570] sm:$0xff] }
 0x222   : > { %3917 = vmatmul.mubr.f32.vlgmr.msra.gmra.mrb[8].mxu1 %v1553_v48  ;;  %v4413_v48 = vpack.c.bf16 %v3084_v41, %v3083_v40 }
 0x223   : > { %4364 = vmatpush3.bf16.msra.mxu0 %v4363_v14  ;;  %4387 = vmatpush3.bf16.msra.mxu1 %v4386_v46  ;;  %v3064_v14 = vld [vmem:[%s6830_s3 + $0x478] sm:$0xff]  ;;  %v3067_v46 = vld [vmem:[%s6830_s3 + $0x490] sm:$0xff] }
 0x224   : > { %4366 = vmatprep.subr.bf16.mxu0 %v4365_v49  ;;  %4388 = vmatprep.subr.bf16.mxu1 %v5098_v0  ;;  %v3085_v49 = vld [vmem:[%s6830_s3 + $0x520] sm:$0xff]  ;;  %v4407_v52 = vpack.c.bf16 %v3064_v14, %v3063_v44  ;;  %v4415_v53 = vpack.c.bf16 %v3068_v47, %v3067_v46  ;;  %v3080_v44 = vld [vmem:[%s6830_s3 + $0x4f8] sm:$0xff]  ;;  %v3130_v47 = vld [vmem:[%s6830_s3 + $0x688] sm:$0xff] }
 0x225   : > { %3951 = vmatprep.mubr.msk.f32.mxu1 %vm5108_vm0, %v5107_v12  ;;  %v3108_v14 = vld [vmem:[%s6830_s3 + $0x5d8] sm:$0xff]  ;;  %v3129_v46 = vld [vmem:[%s6830_s3 + $0x680] sm:$0xff] }
 0x227   : > { %4368 = vmatpush3.bf16.msra.mxu0 %v4367_v54  ;;  %4390 = vmatpush3.bf16.msra.mxu1 %v4389_v56  ;;  %v4417_v54 = vpack.c.bf16 %v3086_v50, %v3085_v49  ;;  %v3070_v56 = vld [vmem:[%s6830_s3 + $0x4a8] sm:$0xff]  ;;  %v3109_v50 = vld [vmem:[%s6830_s3 + $0x5e0] sm:$0xff] }
 0x228   : > { %4370 = vmatprep.subr.bf16.mxu0 %v4369_v58  ;;  %4391 = vmatprep.subr.bf16.mxu1 %v5098_v0  ;;  %v3098_v58 = vld [vmem:[%s6830_s3 + $0x588] sm:$0xff]  ;;  %v4419_v60 = vpack.c.bf16 %v3070_v56, %v3069_v17  ;;  %v3132_v56 = vld [vmem:[%s6830_s3 + $0x698] sm:$0xff] }
 0x229   : > { %v4442_v61 = vpack.c.bf16 %v3098_v58, %v3097_v57  ;;  %v3114_v17 = vld [vmem:[%s6830_s3 + $0x608] sm:$0xff] }
 0x22b   : > { %4372 = vmatpush3.bf16.msra.mxu0 %v4371_v62  ;;  %4393 = vmatpush3.bf16.msra.mxu1 %v4392_v63  ;;  %v1749_v62 = vrot.slane %v5728_v34, 2  ;;  %v4421_v63 = vpack.c.bf16 %v3088_v59, %v3087_v24  ;;  %v3111_v24 = vld [vmem:[%s6830_s3 + $0x5f0] sm:$0xff]  ;;  %v1943_v59 = vrot.slane %v5688_v4, 3 }
 0x22c   : > { %4374 = vmatprep.subr.bf16.mxu0 %v4373_v2  ;;  %4394 = vmatprep.subr.bf16.mxu1 %v5098_v0  ;;  %v3099_v2 = vld [vmem:[%s6830_s3 + $0x590] sm:$0xff] }
 0x22d   : > { %v4445_v11 = vpack.c.bf16 %v3100_v3, %v3099_v2  ;;  %v2140_v2 = vrot.slane %v5690_v5, 4 }
 0x22f   : > { %4376 = vmatpush3.bf16.msra.mxu0 %v4375_v13  ;;  %4396 = vmatpush3.bf16.msra.mxu1 %v4395_v55  ;;  %v3073_v13 = vld [vmem:[%s6830_s3 + $0x4c0] sm:$0xff]  ;;  %v4425_v55 = vpack.c.bf16 %v3090_v6, %v3089_v20 }
 0x230   : > { %4378 = vmatprep.subr.bf16.mxu0 %v4377_v7  ;;  %4397 = vmatprep.subr.bf16.mxu1 %v5098_v0  ;;  %v3101_v7 = vld [vmem:[%s6830_s3 + $0x5a0] sm:$0xff]  ;;  %v4427_v22 = vpack.c.bf16 %v3074_v16, %v3073_v13  ;;  %v3135_v16 = vld [vmem:[%s6830_s3 + $0x6b0] sm:$0xff] }
 0x231   : > { %v4448_v25 = vpack.c.bf16 %v3102_v23, %v3101_v7  ;;  %v3117_v6 = vld [vmem:[%s6830_s3 + $0x620] sm:$0xff]  ;;  %v3136_v7 = vld [vmem:[%s6830_s3 + $0x6b8] sm:$0xff] }
 0x232   : > { %v3145_v13 = vld [vmem:[%s6830_s3 + $0x700] sm:$0xff] }
 0x233   : > { %4380 = vmatpush3.bf16.msra.mxu0 %v4379_v26  ;;  %4399 = vmatpush3.bf16.msra.mxu1 %v4398_v27  ;;  %v3075_v26 = vld [vmem:[%s6830_s3 + $0x4d0] sm:$0xff]  ;;  %v4429_v27 = vpack.c.bf16 %v3092_v19, %v3091_v18 }
 0x234   : > { %4382 = vmatprep.subr.bf16.mxu0 %v4381_v28  ;;  %4400 = vmatprep.subr.bf16.mxu1 %v5098_v0  ;;  %v3103_v28 = vld [vmem:[%s6830_s3 + $0x5b0] sm:$0xff]  ;;  %v4431_v31 = vpack.c.bf16 %v3076_v21, %v3075_v26  ;;  %v3120_v26 = vld [vmem:[%s6830_s3 + $0x638] sm:$0xff] }
 0x235   : > { %v4451_v32 = vpack.c.bf16 %v3104_v29, %v3103_v28  ;;  %v3119_v19 = vld [vmem:[%s6830_s3 + $0x630] sm:$0xff]  ;;  %v3148_v21 = vld [vmem:[%s6830_s3 + $0x718] sm:$0xff]  ;;  %v3137_v28 = vld [vmem:[%s6830_s3 + $0x6c0] sm:$0xff] }
 0x236   : > { %v3138_v29 = vld [vmem:[%s6830_s3 + $0x6c8] sm:$0xff] }
 0x237   : > { %4384 = vmatpush3.bf16.msra.mxu0 %v4383_v33  ;;  %4402 = vmatpush3.bf16.msra.mxu1 %v4401_v35  ;;  %v3077_v33 = vld [vmem:[%s6830_s3 + $0x4e0] sm:$0xff]  ;;  %v4433_v35 = vpack.c.bf16 %v3094_v30, %v3093_v10  ;;  %v4479_v10 = vpack.c.bf16 %v3120_v26, %v3119_v19  ;;  %v3164_v19 = vld [vmem:[%s6830_s3 + $0x798] sm:$0xff]  ;;  %v3182_v26 = vld [vmem:[%s6830_s3 + $0x828] sm:$0xff] }
 0x238   : > { %4403 = vmatprep.subr.bf16.mxu1 %v5098_v0  ;;  %4410 = vmatprep.subr.bf16.mxu0 %v4409_v37  ;;  %v3105_v37 = vld [vmem:[%s6830_s3 + $0x5c0] sm:$0xff]  ;;  %v4435_v40 = vpack.c.bf16 %v3078_v36, %v3077_v33  ;;  %v3122_v33 = vld [vmem:[%s6830_s3 + $0x648] sm:$0xff] }
 0x239   : > { %v4454_v41 = vpack.c.bf16 %v3106_v8, %v3105_v37  ;;  %v3150_v36 = vld [vmem:[%s6830_s3 + $0x728] sm:$0xff]  ;;  %v3139_v37 = vld [vmem:[%s6830_s3 + $0x6d0] sm:$0xff]  ;;  %v3140_v8 = vld [vmem:[%s6830_s3 + $0x6d8] sm:$0xff] }
 0x23a   : > { %1818 = vmatmul.mubr.f32.vlgmr.msra.gmra.mrb[12].mxu0 %v1747_v45  ;;  %v3107_v45 = vld [vmem:[%s6830_s3 + $0x5d0] sm:$0xff] }
 0x23b   : > { %4405 = vmatpush3.bf16.msra.mxu1 %v4404_v42  ;;  %4412 = vmatpush3.bf16.msra.mxu0 %v4411_v43  ;;  %v3079_v42 = vld [vmem:[%s6830_s3 + $0x4f0] sm:$0xff]  ;;  %v4437_v43 = vpack.c.bf16 %v3096_v39, %v3095_v38  ;;  %v4457_v49 = vpack.c.bf16 %v3108_v14, %v3107_v45  ;;  %v3141_v45 = vld [vmem:[%s6830_s3 + $0x6e0] sm:$0xff]  ;;  %v3142_v14 = vld [vmem:[%s6830_s3 + $0x6e8] sm:$0xff] }
 0x23c   : > { %2013 = vmatprep.mubr.f32.mxu0 %v1944_v51  ;;  %4406 = vmatprep.subr.bf16.mxu1 %v5098_v0  ;;  %v4465_v51 = vpack.c.bf16 %v3130_v47, %v3129_v46 }
 0x23d   : > { %4414 = vmatprep.subr.bf16.mxu0 %v4413_v48  ;;  %v4439_v48 = vpack.c.bf16 %v3080_v44, %v3079_v42  ;;  %v3124_v42 = vld [vmem:[%s6830_s3 + $0x658] sm:$0xff] }
 0x23e   : > { %v3152_v44 = vld [vmem:[%s6830_s3 + $0x738] sm:$0xff] }
 0x23f   : > { %4408 = vmatpush3.bf16.msra.mxu1 %v4407_v52  ;;  %4416 = vmatpush3.bf16.msra.mxu0 %v4415_v53  ;;  %v3110_v52 = vld [vmem:[%s6830_s3 + $0x5e8] sm:$0xff]  ;;  %v3113_v53 = vld [vmem:[%s6830_s3 + $0x600] sm:$0xff] }
 0x240   : > { %4418 = vmatprep.subr.bf16.mxu0 %v4417_v54  ;;  %4441 = vmatprep.subr.bf16.mxu1 %v5098_v0  ;;  %v3131_v54 = vld [vmem:[%s6830_s3 + $0x690] sm:$0xff]  ;;  %v4460_v57 = vpack.c.bf16 %v3110_v52, %v3109_v50  ;;  %v4467_v58 = vpack.c.bf16 %v3114_v17, %v3113_v53  ;;  %v3126_v50 = vld [vmem:[%s6830_s3 + $0x668] sm:$0xff]  ;;  %v3144_v17 = vld [vmem:[%s6830_s3 + $0x6f8] sm:$0xff] }
 0x241   : > { %v3154_v52 = vld [vmem:[%s6830_s3 + $0x748] sm:$0xff]  ;;  %v3143_v53 = vld [vmem:[%s6830_s3 + $0x6f0] sm:$0xff] }
 0x242   : > { %3952 = vmatmul.mubr.f32.vlgmr.msra.gmra.mrb[8].mxu1 %v1749_v62  ;;  %v4469_v62 = vpack.c.bf16 %v3132_v56, %v3131_v54 }
 0x243   : > { %4420 = vmatpush3.bf16.msra.mxu0 %v4419_v60  ;;  %4443 = vmatpush3.bf16.msra.mxu1 %v4442_v61  ;;  %v3112_v60 = vld [vmem:[%s6830_s3 + $0x5f8] sm:$0xff]  ;;  %v3115_v61 = vld [vmem:[%s6830_s3 + $0x610] sm:$0xff] }
 0x244   : > { %4422 = vmatprep.subr.bf16.mxu0 %v4421_v63  ;;  %4444 = vmatprep.subr.bf16.mxu1 %v5098_v0  ;;  %v3133_v63 = vld [vmem:[%s6830_s3 + $0x6a0] sm:$0xff]  ;;  %v4463_v3 = vpack.c.bf16 %v3112_v60, %v3111_v24  ;;  %v4471_v20 = vpack.c.bf16 %v3116_v15, %v3115_v61  ;;  %v3128_v24 = vld [vmem:[%s6830_s3 + $0x678] sm:$0xff]  ;;  %v3178_v15 = vld [vmem:[%s6830_s3 + $0x808] sm:$0xff] }
 0x245   : > { %3986 = vmatprep.mubr.msk.f32.mxu1 %vm5108_vm0, %v5107_v12  ;;  %v3156_v60 = vld [vmem:[%s6830_s3 + $0x758] sm:$0xff]  ;;  %v3177_v61 = vld [vmem:[%s6830_s3 + $0x800] sm:$0xff] }
 0x247   : > { %4424 = vmatpush3.bf16.msra.mxu0 %v4423_v9  ;;  %4446 = vmatpush3.bf16.msra.mxu1 %v4445_v11  ;;  %v4473_v9 = vpack.c.bf16 %v3134_v1, %v3133_v63  ;;  %v3118_v11 = vld [vmem:[%s6830_s3 + $0x628] sm:$0xff]  ;;  %v3157_v1 = vld [vmem:[%s6830_s3 + $0x760] sm:$0xff] }
 0x248   : > { %4426 = vmatprep.subr.bf16.mxu0 %v4425_v55  ;;  %4447 = vmatprep.subr.bf16.mxu1 %v5098_v0  ;;  %v3146_v55 = vld [vmem:[%s6830_s3 + $0x708] sm:$0xff]  ;;  %v4475_v23 = vpack.c.bf16 %v3118_v11, %v3117_v6  ;;  %v3180_v11 = vld [vmem:[%s6830_s3 + $0x818] sm:$0xff] }
 0x249   : > { %v4498_v18 = vpack.c.bf16 %v3146_v55, %v3145_v13  ;;  %v3162_v6 = vld [vmem:[%s6830_s3 + $0x788] sm:$0xff] }
 0x24b   : > { %4428 = vmatpush3.bf16.msra.mxu0 %v4427_v22  ;;  %4449 = vmatpush3.bf16.msra.mxu1 %v4448_v25  ;;  %v1945_v22 = vrot.slane %v5728_v34, 3  ;;  %v4477_v25 = vpack.c.bf16 %v3136_v7, %v3135_v16  ;;  %v3159_v16 = vld [vmem:[%s6830_s3 + $0x770] sm:$0xff]  ;;  %v2139_v7 = vrot.slane %v5688_v4, 4 }
 0x24c   : > { %4430 = vmatprep.subr.bf16.mxu0 %v4429_v27  ;;  %4450 = vmatprep.subr.bf16.mxu1 %v5098_v0  ;;  %v3147_v27 = vld [vmem:[%s6830_s3 + $0x710] sm:$0xff] }
 0x24d   : > { %v4501_v30 = vpack.c.bf16 %v3148_v21, %v3147_v27  ;;  %v2336_v27 = vrot.slane %v5690_v5, 5 }
 0x24f   : > { %4432 = vmatpush3.bf16.msra.mxu0 %v4431_v31  ;;  %4452 = vmatpush3.bf16.msra.mxu1 %v4451_v32  ;;  %v3121_v31 = vld [vmem:[%s6830_s3 + $0x640] sm:$0xff]  ;;  %v4481_v32 = vpack.c.bf16 %v3138_v29, %v3137_v28 }
 0x250   : > { %4434 = vmatprep.subr.bf16.mxu0 %v4433_v35  ;;  %4453 = vmatprep.subr.bf16.mxu1 %v5098_v0  ;;  %v3149_v35 = vld [vmem:[%s6830_s3 + $0x720] sm:$0xff]  ;;  %v4483_v38 = vpack.c.bf16 %v3122_v33, %v3121_v31  ;;  %v3183_v33 = vld [vmem:[%s6830_s3 + $0x830] sm:$0xff] }
 0x251   : > { %v4504_v39 = vpack.c.bf16 %v3150_v36, %v3149_v35  ;;  %v3165_v29 = vld [vmem:[%s6830_s3 + $0x7a0] sm:$0xff]  ;;  %v3184_v35 = vld [vmem:[%s6830_s3 + $0x838] sm:$0xff] }
 0x252   : > { %v3193_v31 = vld [vmem:[%s6830_s3 + $0x880] sm:$0xff] }
 0x253   : > { %4436 = vmatpush3.bf16.msra.mxu0 %v4435_v40  ;;  %4455 = vmatpush3.bf16.msra.mxu1 %v4454_v41  ;;  %v3123_v40 = vld [vmem:[%s6830_s3 + $0x650] sm:$0xff]  ;;  %v4485_v41 = vpack.c.bf16 %v3140_v8, %v3139_v37 }
 0x254   : > { %4438 = vmatprep.subr.bf16.mxu0 %v4437_v43  ;;  %4456 = vmatprep.subr.bf16.mxu1 %v5098_v0  ;;  %v3151_v43 = vld [vmem:[%s6830_s3 + $0x730] sm:$0xff]  ;;  %v4487_v46 = vpack.c.bf16 %v3124_v42, %v3123_v40  ;;  %v3168_v40 = vld [vmem:[%s6830_s3 + $0x7b8] sm:$0xff] }
 0x255   : > { %v4507_v47 = vpack.c.bf16 %v3152_v44, %v3151_v43  ;;  %v3167_v8 = vld [vmem:[%s6830_s3 + $0x7b0] sm:$0xff]  ;;  %v3196_v42 = vld [vmem:[%s6830_s3 + $0x898] sm:$0xff]  ;;  %v3185_v43 = vld [vmem:[%s6830_s3 + $0x840] sm:$0xff] }
 0x256   : > { %v3186_v44 = vld [vmem:[%s6830_s3 + $0x848] sm:$0xff] }
 0x257   : > { %4440 = vmatpush3.bf16.msra.mxu0 %v4439_v48  ;;  %4458 = vmatpush3.bf16.msra.mxu1 %v4457_v49  ;;  %v3125_v48 = vld [vmem:[%s6830_s3 + $0x660] sm:$0xff]  ;;  %v4489_v49 = vpack.c.bf16 %v3142_v14, %v3141_v45  ;;  %v4535_v45 = vpack.c.bf16 %v3168_v40, %v3167_v8  ;;  %v3212_v8 = vld [vmem:[%s6830_s3 + $0x918] sm:$0xff]  ;;  %v3230_v40 = vld [vmem:[%s6830_s3 + $0x9a8] sm:$0xff] }
 0x258   : > { %4459 = vmatprep.subr.bf16.mxu1 %v5098_v0  ;;  %4466 = vmatprep.subr.bf16.mxu0 %v4465_v51  ;;  %v3153_v51 = vld [vmem:[%s6830_s3 + $0x740] sm:$0xff]  ;;  %v4491_v54 = vpack.c.bf16 %v3126_v50, %v3125_v48  ;;  %v3170_v48 = vld [vmem:[%s6830_s3 + $0x7c8] sm:$0xff] }
 0x259   : > { %v4510_v56 = vpack.c.bf16 %v3154_v52, %v3153_v51  ;;  %v3198_v50 = vld [vmem:[%s6830_s3 + $0x8a8] sm:$0xff]  ;;  %v3187_v51 = vld [vmem:[%s6830_s3 + $0x850] sm:$0xff]  ;;  %v3188_v52 = vld [vmem:[%s6830_s3 + $0x858] sm:$0xff] }
 0x25a   : > { %2014 = vmatmul.mubr.f32.vlgmr.msra.gmra.mrb[14].mxu0 %v1943_v59  ;;  %v3155_v59 = vld [vmem:[%s6830_s3 + $0x750] sm:$0xff] }
 0x25b   : > { %4461 = vmatpush3.bf16.msra.mxu1 %v4460_v57  ;;  %4468 = vmatpush3.bf16.msra.mxu0 %v4467_v58  ;;  %v3127_v57 = vld [vmem:[%s6830_s3 + $0x670] sm:$0xff]  ;;  %v4493_v58 = vpack.c.bf16 %v3144_v17, %v3143_v53  ;;  %v4513_v63 = vpack.c.bf16 %v3156_v60, %v3155_v59  ;;  %v3189_v59 = vld [vmem:[%s6830_s3 + $0x860] sm:$0xff]  ;;  %v3190_v60 = vld [vmem:[%s6830_s3 + $0x868] sm:$0xff] }
 0x25c   : > { %2209 = vmatprep.mubr.f32.mxu0 %v2140_v2  ;;  %4462 = vmatprep.subr.bf16.mxu1 %v5098_v0  ;;  %v4521_v2 = vpack.c.bf16 %v3178_v15, %v3177_v61 }
 0x25d   : > { %4470 = vmatprep.subr.bf16.mxu0 %v4469_v62  ;;  %v4495_v62 = vpack.c.bf16 %v3128_v24, %v3127_v57  ;;  %v3172_v57 = vld [vmem:[%s6830_s3 + $0x7d8] sm:$0xff] }
 0x25e   : > { %v3200_v24 = vld [vmem:[%s6830_s3 + $0x8b8] sm:$0xff] }
 0x25f   : > { %4464 = vmatpush3.bf16.msra.mxu1 %v4463_v3  ;;  %4472 = vmatpush3.bf16.msra.mxu0 %v4471_v20  ;;  %v3158_v3 = vld [vmem:[%s6830_s3 + $0x768] sm:$0xff]  ;;  %v3161_v20 = vld [vmem:[%s6830_s3 + $0x780] sm:$0xff] }
 0x260   : > { %4474 = vmatprep.subr.bf16.mxu0 %v4473_v9  ;;  %4497 = vmatprep.subr.bf16.mxu1 %v5098_v0  ;;  %v3179_v9 = vld [vmem:[%s6830_s3 + $0x810] sm:$0xff]  ;;  %v4516_v13 = vpack.c.bf16 %v3158_v3, %v3157_v1  ;;  %v4523_v55 = vpack.c.bf16 %v3162_v6, %v3161_v20  ;;  %v3174_v1 = vld [vmem:[%s6830_s3 + $0x7e8] sm:$0xff]  ;;  %v3192_v6 = vld [vmem:[%s6830_s3 + $0x878] sm:$0xff] }
 0x261   : > { %v3202_v3 = vld [vmem:[%s6830_s3 + $0x8c8] sm:$0xff]  ;;  %v3191_v20 = vld [vmem:[%s6830_s3 + $0x870] sm:$0xff] }
 0x262   : > { %3987 = vmatmul.mubr.f32.vlgmr.msra.gmra.mrb[8].mxu1 %v1945_v22  ;;  %v4525_v22 = vpack.c.bf16 %v3180_v11, %v3179_v9 }
 0x263   : > { %4476 = vmatpush3.bf16.msra.mxu0 %v4475_v23  ;;  %4499 = vmatpush3.bf16.msra.mxu1 %v4498_v18  ;;  %v3160_v23 = vld [vmem:[%s6830_s3 + $0x778] sm:$0xff]  ;;  %v3163_v18 = vld [vmem:[%s6830_s3 + $0x790] sm:$0xff] }
 0x264   : > { %4478 = vmatprep.subr.bf16.mxu0 %v4477_v25  ;;  %4500 = vmatprep.subr.bf16.mxu1 %v5098_v0  ;;  %v3181_v25 = vld [vmem:[%s6830_s3 + $0x820] sm:$0xff]  ;;  %v4519_v21 = vpack.c.bf16 %v3160_v23, %v3159_v16  ;;  %v4527_v28 = vpack.c.bf16 %v3164_v19, %v3163_v18  ;;  %v3176_v16 = vld [vmem:[%s6830_s3 + $0x7f8] sm:$0xff]  ;;  %v3226_v19 = vld [vmem:[%s6830_s3 + $0x988] sm:$0xff] }
 0x265   : > { %4021 = vmatprep.mubr.msk.f32.mxu1 %vm5108_vm0, %v5107_v12  ;;  %v3204_v23 = vld [vmem:[%s6830_s3 + $0x8d8] sm:$0xff]  ;;  %v3225_v18 = vld [vmem:[%s6830_s3 + $0x980] sm:$0xff] }
 0x267   : > { %4480 = vmatpush3.bf16.msra.mxu0 %v4479_v10  ;;  %4502 = vmatpush3.bf16.msra.mxu1 %v4501_v30  ;;  %v4529_v10 = vpack.c.bf16 %v3182_v26, %v3181_v25  ;;  %v3166_v30 = vld [vmem:[%s6830_s3 + $0x7a8] sm:$0xff]  ;;  %v3205_v26 = vld [vmem:[%s6830_s3 + $0x8e0] sm:$0xff] }
 0x268   : > { %4482 = vmatprep.subr.bf16.mxu0 %v4481_v32  ;;  %4503 = vmatprep.subr.bf16.mxu1 %v5098_v0  ;;  %v3194_v32 = vld [vmem:[%s6830_s3 + $0x888] sm:$0xff]  ;;  %v4531_v36 = vpack.c.bf16 %v3166_v30, %v3165_v29  ;;  %v3228_v30 = vld [vmem:[%s6830_s3 + $0x998] sm:$0xff] }
 0x269   : > { %v4554_v37 = vpack.c.bf16 %v3194_v32, %v3193_v31  ;;  %v3210_v29 = vld [vmem:[%s6830_s3 + $0x908] sm:$0xff] }
 0x26b   : > { %4484 = vmatpush3.bf16.msra.mxu0 %v4483_v38  ;;  %4505 = vmatpush3.bf16.msra.mxu1 %v4504_v39  ;;  %v2141_v38 = vrot.slane %v5728_v34, 4  ;;  %v4533_v39 = vpack.c.bf16 %v3184_v35, %v3183_v33  ;;  %v3207_v33 = vld [vmem:[%s6830_s3 + $0x8f0] sm:$0xff]  ;;  %v2335_v35 = vrot.slane %v5688_v4, 5 }
 0x26c   : > { %4486 = vmatprep.subr.bf16.mxu0 %v4485_v41  ;;  %4506 = vmatprep.subr.bf16.mxu1 %v5098_v0  ;;  %v3195_v41 = vld [vmem:[%s6830_s3 + $0x890] sm:$0xff] }
 0x26d   : > { %v4557_v14 = vpack.c.bf16 %v3196_v42, %v3195_v41  ;;  %v2532_v41 = vrot.slane %v5690_v5, 6 }
 0x26f   : > { %4488 = vmatpush3.bf16.msra.mxu0 %v4487_v46  ;;  %4508 = vmatpush3.bf16.msra.mxu1 %v4507_v47  ;;  %v3169_v46 = vld [vmem:[%s6830_s3 + $0x7c0] sm:$0xff]  ;;  %v4537_v47 = vpack.c.bf16 %v3186_v44, %v3185_v43 }
 0x270   : > { %4490 = vmatprep.subr.bf16.mxu0 %v4489_v49  ;;  %4509 = vmatprep.subr.bf16.mxu1 %v5098_v0  ;;  %v3197_v49 = vld [vmem:[%s6830_s3 + $0x8a0] sm:$0xff]  ;;  %v4539_v53 = vpack.c.bf16 %v3170_v48, %v3169_v46  ;;  %v3231_v48 = vld [vmem:[%s6830_s3 + $0x9b0] sm:$0xff] }
 0x271   : > { %v4560_v17 = vpack.c.bf16 %v3198_v50, %v3197_v49  ;;  %v3213_v44 = vld [vmem:[%s6830_s3 + $0x920] sm:$0xff]  ;;  %v3232_v49 = vld [vmem:[%s6830_s3 + $0x9b8] sm:$0xff] }
 0x272   : > { %v3241_v46 = vld [vmem:[%s6830_s3 + $0xa00] sm:$0xff] }
 0x273   : > { %4492 = vmatpush3.bf16.msra.mxu0 %v4491_v54  ;;  %4511 = vmatpush3.bf16.msra.mxu1 %v4510_v56  ;;  %v3171_v54 = vld [vmem:[%s6830_s3 + $0x7d0] sm:$0xff]  ;;  %v4541_v56 = vpack.c.bf16 %v3188_v52, %v3187_v51 }
 0x274   : > { %4494 = vmatprep.subr.bf16.mxu0 %v4493_v58  ;;  %4512 = vmatprep.subr.bf16.mxu1 %v5098_v0  ;;  %v3199_v58 = vld [vmem:[%s6830_s3 + $0x8b0] sm:$0xff]  ;;  %v4543_v61 = vpack.c.bf16 %v3172_v57, %v3171_v54  ;;  %v3216_v54 = vld [vmem:[%s6830_s3 + $0x938] sm:$0xff] }
 0x275   : > { %v4563_v15 = vpack.c.bf16 %v3200_v24, %v3199_v58  ;;  %v3215_v52 = vld [vmem:[%s6830_s3 + $0x930] sm:$0xff]  ;;  %v3244_v57 = vld [vmem:[%s6830_s3 + $0xa18] sm:$0xff]  ;;  %v3233_v58 = vld [vmem:[%s6830_s3 + $0x9c0] sm:$0xff] }
 0x276   : > { %v3234_v24 = vld [vmem:[%s6830_s3 + $0x9c8] sm:$0xff] }
 0x277   : > { %4496 = vmatpush3.bf16.msra.mxu0 %v4495_v62  ;;  %4514 = vmatpush3.bf16.msra.mxu1 %v4513_v63  ;;  %v3173_v62 = vld [vmem:[%s6830_s3 + $0x7e0] sm:$0xff]  ;;  %v4545_v63 = vpack.c.bf16 %v3190_v60, %v3189_v59  ;;  %v4591_v59 = vpack.c.bf16 %v3216_v54, %v3215_v52  ;;  %v3260_v52 = vld [vmem:[%s6830_s3 + $0xa98] sm:$0xff]  ;;  %v3278_v54 = vld [vmem:[%s6830_s3 + $0xb28] sm:$0xff] }
 0x278   : > { %4515 = vmatprep.subr.bf16.mxu1 %v5098_v0  ;;  %4522 = vmatprep.subr.bf16.mxu0 %v4521_v2  ;;  %v3201_v2 = vld [vmem:[%s6830_s3 + $0x8c0] sm:$0xff]  ;;  %v4547_v9 = vpack.c.bf16 %v3174_v1, %v3173_v62  ;;  %v3218_v62 = vld [vmem:[%s6830_s3 + $0x948] sm:$0xff] }
 0x279   : > { %v4566_v11 = vpack.c.bf16 %v3202_v3, %v3201_v2  ;;  %v3246_v1 = vld [vmem:[%s6830_s3 + $0xa28] sm:$0xff]  ;;  %v3235_v2 = vld [vmem:[%s6830_s3 + $0x9d0] sm:$0xff]  ;;  %v3236_v3 = vld [vmem:[%s6830_s3 + $0x9d8] sm:$0xff] }
 0x27a   : > { %2210 = vmatmul.mubr.f32.vlgmr.msra.gmra.mrb[16].mxu0 %v2139_v7  ;;  %v3203_v7 = vld [vmem:[%s6830_s3 + $0x8d0] sm:$0xff] }
 0x27b   : > { %4517 = vmatpush3.bf16.msra.mxu1 %v4516_v13  ;;  %4524 = vmatpush3.bf16.msra.mxu0 %v4523_v55  ;;  %v3175_v13 = vld [vmem:[%s6830_s3 + $0x7f0] sm:$0xff]  ;;  %v4549_v55 = vpack.c.bf16 %v3192_v6, %v3191_v20  ;;  %v4569_v25 = vpack.c.bf16 %v3204_v23, %v3203_v7  ;;  %v3237_v7 = vld [vmem:[%s6830_s3 + $0x9e0] sm:$0xff]  ;;  %v3238_v23 = vld [vmem:[%s6830_s3 + $0x9e8] sm:$0xff] }
 0x27c   : > { %2405 = vmatprep.mubr.f32.mxu0 %v2336_v27  ;;  %4518 = vmatprep.subr.bf16.mxu1 %v5098_v0  ;;  %v4577_v27 = vpack.c.bf16 %v3226_v19, %v3225_v18 }
 0x27d   : > { %4526 = vmatprep.subr.bf16.mxu0 %v4525_v22  ;;  %v4551_v22 = vpack.c.bf16 %v3176_v16, %v3175_v13  ;;  %v3220_v13 = vld [vmem:[%s6830_s3 + $0x958] sm:$0xff] }
 0x27e   : > { %v3248_v16 = vld [vmem:[%s6830_s3 + $0xa38] sm:$0xff] }
 0x27f   : > { %4520 = vmatpush3.bf16.msra.mxu1 %v4519_v21  ;;  %4528 = vmatpush3.bf16.msra.mxu0 %v4527_v28  ;;  %v3206_v21 = vld [vmem:[%s6830_s3 + $0x8e8] sm:$0xff]  ;;  %v3209_v28 = vld [vmem:[%s6830_s3 + $0x900] sm:$0xff] }
 0x280   : > { %4530 = vmatprep.subr.bf16.mxu0 %v4529_v10  ;;  %4553 = vmatprep.subr.bf16.mxu1 %v5098_v0  ;;  %v3227_v10 = vld [vmem:[%s6830_s3 + $0x990] sm:$0xff]  ;;  %v4572_v31 = vpack.c.bf16 %v3206_v21, %v3205_v26  ;;  %v4579_v32 = vpack.c.bf16 %v3210_v29, %v3209_v28  ;;  %v3222_v26 = vld [vmem:[%s6830_s3 + $0x968] sm:$0xff]  ;;  %v3240_v29 = vld [vmem:[%s6830_s3 + $0x9f8] sm:$0xff] }
 0x281   : > { %v3250_v21 = vld [vmem:[%s6830_s3 + $0xa48] sm:$0xff]  ;;  %v3239_v28 = vld [vmem:[%s6830_s3 + $0x9f0] sm:$0xff] }
 0x282   : > { %4022 = vmatmul.mubr.f32.vlgmr.msra.gmra.mrb[8].mxu1 %v2141_v38  ;;  %v4581_v38 = vpack.c.bf16 %v3228_v30, %v3227_v10 }
 0x283   : > { %4532 = vmatpush3.bf16.msra.mxu0 %v4531_v36  ;;  %4555 = vmatpush3.bf16.msra.mxu1 %v4554_v37  ;;  %v3208_v36 = vld [vmem:[%s6830_s3 + $0x8f8] sm:$0xff]  ;;  %v3211_v37 = vld [vmem:[%s6830_s3 + $0x910] sm:$0xff] }
 0x284   : > { %4534 = vmatprep.subr.bf16.mxu0 %v4533_v39  ;;  %4556 = vmatprep.subr.bf16.mxu1 %v5098_v0  ;;  %v3229_v39 = vld [vmem:[%s6830_s3 + $0x9a0] sm:$0xff]  ;;  %v4575_v42 = vpack.c.bf16 %v3208_v36, %v3207_v33  ;;  %v4583_v43 = vpack.c.bf16 %v3212_v8, %v3211_v37  ;;  %v3224_v33 = vld [vmem:[%s6830_s3 + $0x978] sm:$0xff]  ;;  %v3274_v8 = vld [vmem:[%s6830_s3 + $0xb08] sm:$0xff] }
 0x285   : > { %4056 = vmatprep.mubr.msk.f32.mxu1 %vm5108_vm0, %v5107_v12  ;;  %v3252_v36 = vld [vmem:[%s6830_s3 + $0xa58] sm:$0xff]  ;;  %v3273_v37 = vld [vmem:[%s6830_s3 + $0xb00] sm:$0xff] }
 0x287   : > { %4536 = vmatpush3.bf16.msra.mxu0 %v4535_v45  ;;  %4558 = vmatpush3.bf16.msra.mxu1 %v4557_v14  ;;  %v4585_v45 = vpack.c.bf16 %v3230_v40, %v3229_v39  ;;  %v3214_v14 = vld [vmem:[%s6830_s3 + $0x928] sm:$0xff]  ;;  %v3253_v40 = vld [vmem:[%s6830_s3 + $0xa60] sm:$0xff] }
 0x288   : > { %4538 = vmatprep.subr.bf16.mxu0 %v4537_v47  ;;  %4559 = vmatprep.subr.bf16.mxu1 %v5098_v0  ;;  %v3242_v47 = vld [vmem:[%s6830_s3 + $0xa08] sm:$0xff]  ;;  %v4587_v50 = vpack.c.bf16 %v3214_v14, %v3213_v44  ;;  %v3276_v14 = vld [vmem:[%s6830_s3 + $0xb18] sm:$0xff] }
 0x289   : > { %v4610_v51 = vpack.c.bf16 %v3242_v47, %v3241_v46  ;;  %v3258_v44 = vld [vmem:[%s6830_s3 + $0xa88] sm:$0xff] }
 0x28b   : > { %4540 = vmatpush3.bf16.msra.mxu0 %v4539_v53  ;;  %4561 = vmatpush3.bf16.msra.mxu1 %v4560_v17  ;;  %v2337_v53 = vrot.slane %v5728_v34, 5  ;;  %v4589_v17 = vpack.c.bf16 %v3232_v49, %v3231_v48  ;;  %v3255_v48 = vld [vmem:[%s6830_s3 + $0xa70] sm:$0xff]  ;;  %v2531_v49 = vrot.slane %v5688_v4, 6 }
 0x28c   : > { %4542 = vmatprep.subr.bf16.mxu0 %v4541_v56  ;;  %4562 = vmatprep.subr.bf16.mxu1 %v5098_v0  ;;  %v3243_v56 = vld [vmem:[%s6830_s3 + $0xa10] sm:$0xff] }
 0x28d   : > { %v4613_v60 = vpack.c.bf16 %v3244_v57, %v3243_v56  ;;  %v2728_v56 = vrot.slane %v5690_v5, 7  ;;  %v3289_v5 = vld [vmem:[%s6830_s3 + $0xb80] sm:$0xff] }
 0x28f   : > { %4544 = vmatpush3.bf16.msra.mxu0 %v4543_v61  ;;  %4564 = vmatpush3.bf16.msra.mxu1 %v4563_v15  ;;  %v3217_v61 = vld [vmem:[%s6830_s3 + $0x940] sm:$0xff]  ;;  %v4593_v15 = vpack.c.bf16 %v3234_v24, %v3233_v58 }
 0x290   : > { %4546 = vmatprep.subr.bf16.mxu0 %v4545_v63  ;;  %4565 = vmatprep.subr.bf16.mxu1 %v5098_v0  ;;  %v3245_v63 = vld [vmem:[%s6830_s3 + $0xa20] sm:$0xff]  ;;  %v4595_v20 = vpack.c.bf16 %v3218_v62, %v3217_v61  ;;  %v3290_v61 = vld [vmem:[%s6830_s3 + $0xb88] sm:$0xff]  ;;  %v3280_v62 = vld [vmem:[%s6830_s3 + $0xb38] sm:$0xff] }
 0x291   : > { %v4616_v6 = vpack.c.bf16 %v3246_v1, %v3245_v63  ;;  %v3261_v24 = vld [vmem:[%s6830_s3 + $0xaa0] sm:$0xff]  ;;  %v4666_v1 = vpack.c.bf16 %v3290_v61, %v3289_v5 }
 0x293   : > { %4548 = vmatpush3.bf16.msra.mxu0 %v4547_v9  ;;  %4567 = vmatpush3.bf16.msra.mxu1 %v4566_v11  ;;  %v3219_v9 = vld [vmem:[%s6830_s3 + $0x950] sm:$0xff]  ;;  %v4597_v11 = vpack.c.bf16 %v3236_v3, %v3235_v2  ;;  %v2533_v3 = vrot.slane %v5728_v34, 6 }
 0x294   : > { %4550 = vmatprep.subr.bf16.mxu0 %v4549_v55  ;;  %4568 = vmatprep.subr.bf16.mxu1 %v5098_v0  ;;  %v3247_v55 = vld [vmem:[%s6830_s3 + $0xa30] sm:$0xff]  ;;  %v4599_v18 = vpack.c.bf16 %v3220_v13, %v3219_v9  ;;  %v3281_v13 = vld [vmem:[%s6830_s3 + $0xb40] sm:$0xff] }
 0x295   : > { %v4619_v19 = vpack.c.bf16 %v3248_v16, %v3247_v55  ;;  %v3263_v2 = vld [vmem:[%s6830_s3 + $0xab0] sm:$0xff]  ;;  %v3282_v55 = vld [vmem:[%s6830_s3 + $0xb48] sm:$0xff] }
 0x296   : > { %v3291_v9 = vld [vmem:[%s6830_s3 + $0xb90] sm:$0xff] }
 0x297   : > { %4552 = vmatpush3.bf16.msra.mxu0 %v4551_v22  ;;  %4570 = vmatpush3.bf16.msra.mxu1 %v4569_v25  ;;  %v3221_v22 = vld [vmem:[%s6830_s3 + $0x960] sm:$0xff]  ;;  %v4601_v25 = vpack.c.bf16 %v3238_v23, %v3237_v7 }
 0x298   : > { %4571 = vmatprep.subr.bf16.mxu1 %v5098_v0  ;;  %4578 = vmatprep.subr.bf16.mxu0 %v4577_v27  ;;  %v3249_v27 = vld [vmem:[%s6830_s3 + $0xa40] sm:$0xff]  ;;  %v4603_v10 = vpack.c.bf16 %v3222_v26, %v3221_v22  ;;  %v3283_v26 = vld [vmem:[%s6830_s3 + $0xb50] sm:$0xff] }
 0x299   : > { %v4622_v30 = vpack.c.bf16 %v3250_v21, %v3249_v27  ;;  %v3265_v23 = vld [vmem:[%s6830_s3 + $0xac0] sm:$0xff]  ;;  %v3284_v27 = vld [vmem:[%s6830_s3 + $0xb58] sm:$0xff] }
 0x29a   : > { %2406 = vmatmul.mubr.f32.vlgmr.msra.gmra.mrb[18].mxu0 %v2335_v35  ;;  %v3251_v35 = vld [vmem:[%s6830_s3 + $0xa50] sm:$0xff]  ;;  %v3293_v22 = vld [vmem:[%s6830_s3 + $0xba0] sm:$0xff] }
 0x29b   : > { %4573 = vmatpush3.bf16.msra.mxu1 %v4572_v31  ;;  %4580 = vmatpush3.bf16.msra.mxu0 %v4579_v32  ;;  %v3223_v31 = vld [vmem:[%s6830_s3 + $0x970] sm:$0xff]  ;;  %v4605_v32 = vpack.c.bf16 %v3240_v29, %v3239_v28  ;;  %v4625_v39 = vpack.c.bf16 %v3252_v36, %v3251_v35 }
 0x29c   : > { %2601 = vmatprep.mubr.f32.mxu0 %v2532_v41  ;;  %4574 = vmatprep.subr.bf16.mxu1 %v5098_v0  ;;  %v4633_v41 = vpack.c.bf16 %v3274_v8, %v3273_v37  ;;  %v3267_v29 = vld [vmem:[%s6830_s3 + $0xad0] sm:$0xff]  ;;  %v3269_v37 = vld [vmem:[%s6830_s3 + $0xae0] sm:$0xff] }
 0x29d   : > { %4582 = vmatprep.subr.bf16.mxu0 %v4581_v38  ;;  %v4607_v38 = vpack.c.bf16 %v3224_v33, %v3223_v31  ;;  %v3296_v31 = vld [vmem:[%s6830_s3 + $0xbb8] sm:$0xff]  ;;  %v3286_v33 = vld [vmem:[%s6830_s3 + $0xb68] sm:$0xff] }
 0x29f   : > { %4576 = vmatpush3.bf16.msra.mxu1 %v4575_v42  ;;  %4584 = vmatpush3.bf16.msra.mxu0 %v4583_v43  ;;  %v3254_v42 = vld [vmem:[%s6830_s3 + $0xa68] sm:$0xff]  ;;  %v3257_v43 = vld [vmem:[%s6830_s3 + $0xa80] sm:$0xff] }
 0x2a0   : > { %4586 = vmatprep.subr.bf16.mxu0 %v4585_v45  ;;  %4609 = vmatprep.subr.bf16.mxu1 %v5098_v0  ;;  %v3275_v45 = vld [vmem:[%s6830_s3 + $0xb10] sm:$0xff]  ;;  %v4628_v46 = vpack.c.bf16 %v3254_v42, %v3253_v40  ;;  %v4635_v47 = vpack.c.bf16 %v3258_v44, %v3257_v43  ;;  %v3298_v40 = vld [vmem:[%s6830_s3 + $0xbc8] sm:$0xff]  ;;  %v3288_v43 = vld [vmem:[%s6830_s3 + $0xb78] sm:$0xff] }
 0x2a1   : > { %v3287_v42 = vld [vmem:[%s6830_s3 + $0xb70] sm:$0xff] }
 0x2a2   : > { %4057 = vmatmul.mubr.f32.vlgmr.msra.gmra.mrb[8].mxu1 %v2337_v53  ;;  %v4637_v53 = vpack.c.bf16 %v3276_v14, %v3275_v45 }
 0x2a3   : > { %4588 = vmatpush3.bf16.msra.mxu0 %v4587_v50  ;;  %4611 = vmatpush3.bf16.msra.mxu1 %v4610_v51  ;;  %v3256_v50 = vld [vmem:[%s6830_s3 + $0xa78] sm:$0xff]  ;;  %v3259_v51 = vld [vmem:[%s6830_s3 + $0xa90] sm:$0xff] }
 0x2a4   : > { %4590 = vmatprep.subr.bf16.mxu0 %v4589_v17  ;;  %4612 = vmatprep.subr.bf16.mxu1 %v5098_v0  ;;  %v3277_v17 = vld [vmem:[%s6830_s3 + $0xb20] sm:$0xff]  ;;  %v4631_v57 = vpack.c.bf16 %v3256_v50, %v3255_v48  ;;  %v4639_v58 = vpack.c.bf16 %v3260_v52, %v3259_v51  ;;  %v4661_v48 = vpack.c.bf16 %v3288_v43, %v3287_v42  ;;  %v3299_v50 = vld [vmem:[%s6830_s3 + $0xbd0] sm:$0xff]  ;;  %v3300_v51 = vld [vmem:[%s6830_s3 + $0xbd8] sm:$0xff] }
 0x2a5   : > { %4091 = vmatprep.mubr.msk.f32.mxu1 %vm5108_vm0, %v5107_v12 }
 0x2a7   : > { %4592 = vmatpush3.bf16.msra.mxu0 %v4591_v59  ;;  %4614 = vmatpush3.bf16.msra.mxu1 %v4613_v60  ;;  %v4641_v59 = vpack.c.bf16 %v3278_v54, %v3277_v17  ;;  %v3262_v60 = vld [vmem:[%s6830_s3 + $0xaa8] sm:$0xff]  ;;  %v3301_v17 = vld [vmem:[%s6830_s3 + $0xbe0] sm:$0xff] }
 0x2a8   : > { %4594 = vmatprep.subr.bf16.mxu0 %v4593_v15  ;;  %4615 = vmatprep.subr.bf16.mxu1 %v5098_v0  ;;  %v3279_v15 = vld [vmem:[%s6830_s3 + $0xb30] sm:$0xff]  ;;  %v4643_v63 = vpack.c.bf16 %v3262_v60, %v3261_v24  ;;  %v3302_v54 = vld [vmem:[%s6830_s3 + $0xbe8] sm:$0xff]  ;;  %v3304_v24 = vld [vmem:[%s6830_s3 + $0xbf8] sm:$0xff]  ;;  %v2729_v60 = vrot.slane %v5728_v34, 7 }
 0x2ab   : > { %4596 = vmatpush3.bf16.msra.mxu0 %v4595_v20  ;;  %4617 = vmatpush3.bf16.msra.mxu1 %v4616_v6  ;;  %v4645_v20 = vpack.c.bf16 %v3280_v62, %v3279_v15  ;;  %v3264_v6 = vld [vmem:[%s6830_s3 + $0xab8] sm:$0xff] }
 0x2ac   : > { %4598 = vmatprep.subr.bf16.mxu0 %v4597_v11  ;;  %4618 = vmatprep.subr.bf16.mxu1 %v5098_v0  ;;  %v3292_v11 = vld [vmem:[%s6830_s3 + $0xb98] sm:$0xff]  ;;  %v4647_v16 = vpack.c.bf16 %v3264_v6, %v3263_v2 }
 0x2ad   : > { %v4669_v7 = vpack.c.bf16 %v3292_v11, %v3291_v9 }
 0x2af   : > { %4600 = vmatpush3.bf16.msra.mxu0 %v4599_v18  ;;  %4620 = vmatpush3.bf16.msra.mxu1 %v4619_v19  ;;  %v4649_v18 = vpack.c.bf16 %v3282_v55, %v3281_v13  ;;  %v3266_v19 = vld [vmem:[%s6830_s3 + $0xac8] sm:$0xff] }
 0x2b0   : > { %4602 = vmatprep.subr.bf16.mxu0 %v4601_v25  ;;  %4621 = vmatprep.subr.bf16.mxu1 %v5098_v0  ;;  %v3294_v25 = vld [vmem:[%s6830_s3 + $0xba8] sm:$0xff]  ;;  %v4651_v21 = vpack.c.bf16 %v3266_v19, %v3265_v23 }
 0x2b1   : > { %v4672_v28 = vpack.c.bf16 %v3294_v25, %v3293_v22 }
 0x2b3   : > { %4604 = vmatpush3.bf16.msra.mxu0 %v4603_v10  ;;  %4623 = vmatpush3.bf16.msra.mxu1 %v4622_v30  ;;  %v4653_v10 = vpack.c.bf16 %v3284_v27, %v3283_v26  ;;  %v3268_v30 = vld [vmem:[%s6830_s3 + $0xad8] sm:$0xff] }
 0x2b4   : > { %4606 = vmatprep.subr.bf16.mxu0 %v4605_v32  ;;  %4624 = vmatprep.subr.bf16.mxu1 %v5098_v0  ;;  %v3285_v32 = vld [vmem:[%s6830_s3 + $0xb60] sm:$0xff]  ;;  %v4655_v35 = vpack.c.bf16 %v3268_v30, %v3267_v29 }
 0x2b5   : > { %v4657_v8 = vpack.c.bf16 %v3286_v33, %v3285_v32 }
 0x2b7   : > { %4608 = vmatpush3.bf16.msra.mxu0 %v4607_v38  ;;  %4626 = vmatpush3.bf16.msra.mxu1 %v4625_v39  ;;  %v3270_v38 = vld [vmem:[%s6830_s3 + $0xae8] sm:$0xff]  ;;  %v3297_v39 = vld [vmem:[%s6830_s3 + $0xbc0] sm:$0xff] }
 0x2b8   : > { %4627 = vmatprep.subr.bf16.mxu1 %v5098_v0  ;;  %4634 = vmatprep.subr.bf16.mxu0 %v4633_v41  ;;  %v4659_v14 = vpack.c.bf16 %v3270_v38, %v3269_v37 }
 0x2ba   : > { %2602 = vmatmul.mubr.f32.vlgmr.msra.gmra.mrb[20].mxu0 %v2531_v49  ;;  %v3272_v49 = vld [vmem:[%s6830_s3 + $0xaf8] sm:$0xff] }
 0x2bb   : > { %4629 = vmatpush3.bf16.msra.mxu1 %v4628_v46  ;;  %4636 = vmatpush3.bf16.msra.mxu0 %v4635_v47  ;;  %v4678_v46 = vpack.c.bf16 %v3298_v40, %v3297_v39  ;;  %v3271_v47 = vld [vmem:[%s6830_s3 + $0xaf0] sm:$0xff] }
 0x2bc   : > { %2797 = vmatprep.mubr.f32.mxu0 %v2728_v56  ;;  %4630 = vmatprep.subr.bf16.mxu1 %v5098_v0  ;;  %v4663_v52 = vpack.c.bf16 %v3272_v49, %v3271_v47  ;;  %v4684_v56 = vpack.c.bf16 %v3302_v54, %v3301_v17 }
 0x2bd   : > { %4638 = vmatprep.subr.bf16.mxu0 %v4637_v53  ;;  %v4681_v53 = vpack.c.bf16 %v3300_v51, %v3299_v50 }
 0x2bf   : > { %4632 = vmatpush3.bf16.msra.mxu1 %v4631_v57  ;;  %4640 = vmatpush3.bf16.msra.mxu0 %v4639_v58  ;;  %v2727_v57 = vrot.slane %v5688_v4, 7  ;;  %v3303_v58 = vld [vmem:[%s6830_s3 + $0xbf0] sm:$0xff]  ;;  %v1309_v4 = vld [vmem:[%s6831_s4] sm:$0x1] }
 0x2c0   : > { %4642 = vmatprep.subr.bf16.mxu0 %v4641_v59  ;;  %4665 = vmatprep.subr.bf16.mxu1 %v5098_v0  ;;  %v4687_v59 = vpack.c.bf16 %v3304_v24, %v3303_v58 }
 0x2c2   : > { %4092 = vmatmul.mubr.f32.vlgmr.msra.gmra.mrb[8].mxu1 %v2533_v3 }
 0x2c3   : > { %4644 = vmatpush3.bf16.msra.mxu0 %v4643_v63  ;;  %4667 = vmatpush3.bf16.msra.mxu1 %v4666_v1 }
 0x2c4   : > { %4646 = vmatprep.subr.bf16.mxu0 %v4645_v20  ;;  %4668 = vmatprep.subr.bf16.mxu1 %v5098_v0 }
 0x2c5   : > { %4126 = vmatprep.mubr.msk.f32.mxu1 %vm5108_vm0, %v5107_v12  ;;  %v3295_v12 = vld [vmem:[%s6830_s3 + $0xbb0] sm:$0xff] }
 0x2c6   : > { %v4675_v36 = vpack.c.bf16 %v3296_v31, %v3295_v12 }
 0x2c7   : > { %4648 = vmatpush3.bf16.msra.mxu0 %v4647_v16  ;;  %4670 = vmatpush3.bf16.msra.mxu1 %v4669_v7 }
 0x2c8   : > { %4650 = vmatprep.subr.bf16.mxu0 %v4649_v18  ;;  %4671 = vmatprep.subr.bf16.mxu1 %v5098_v0 }
 0x2cb   : > { %4652 = vmatpush3.bf16.msra.mxu0 %v4651_v21  ;;  %4673 = vmatpush3.bf16.msra.mxu1 %v4672_v28 }
 0x2cc   : > { %4654 = vmatprep.subr.bf16.mxu0 %v4653_v10  ;;  %4674 = vmatprep.subr.bf16.mxu1 %v5098_v0 }
 0x2cd   : > { %v3381_v41 = vpop.f32.mrb[8].mxu0 }
 0x2ce   : > { %v3382_v44 = vpop.f32.mrb[9].mxu0 }
 0x2cf   : > { %v3383_v45 = vadd.f32 %v3382_v44, %v3381_v41  ;;  %4656 = vmatpush3.bf16.msra.mxu0 %v4655_v35  ;;  %4676 = vmatpush3.bf16.msra.mxu1 %v4675_v36 }
 0x2d0   : > { %4658 = vmatprep.subr.bf16.mxu0 %v4657_v8  ;;  %4677 = vmatprep.subr.bf16.mxu1 %v5098_v0 }
 0x2d1   : > { %v4689_v15 = vadd.f32 %v3383_v45, %v1309_v4 }
 0x2d3   : > { %4660 = vmatpush3.bf16.msra.mxu0 %v4659_v14  ;;  %4679 = vmatpush3.bf16.msra.mxu1 %v4678_v46 }
 0x2d4   : > { %4662 = vmatprep.subr.bf16.mxu0 %v4661_v48  ;;  %4680 = vmatprep.subr.bf16.mxu1 %v5098_v0 }
 0x2d7   : > { %4664 = vmatpush3.bf16.msra.mxu0 %v4663_v52  ;;  %4682 = vmatpush3.bf16.msra.mxu1 %v4681_v53 }
 0x2d8   : > { %4683 = vmatprep.subr.bf16.mxu1 %v5098_v0 }
 0x2da   : > { %2798 = vmatmul.mubr.f32.vlgmr.msra.gmra.mrb[22].mxu0 %v2727_v57 }
 0x2db   : > { %4685 = vmatpush3.bf16.msra.mxu1 %v4684_v56 }
 0x2dc   : > { %4686 = vmatprep.subr.bf16.mxu1 %v5098_v0 }
 0x2df   : > { %4688 = vmatpush3.bf16.msra.mxu1 %v4687_v59 }
 0x2e2   : > { %4127 = vmatmul.mubr.f32.vlgmr.msra.gmra.mrb[8].mxu1 %v2729_v60 }
 0x2ed   : > { %v3433_v5 = vpop.f32.mrb[10].mxu0 }
 0x2ee   : > { %v3434_v61 = vpop.f32.mrb[11].mxu0 }
 0x2ef   : > { %v3435_v62 = vadd.f32 %v3434_v61, %v3433_v5 }
 0x2f1   : > { %v4690_v63 = vadd.f32 %v4689_v15, %v3435_v62 }
 0x30d   : > { %v3485_v1 = vpop.f32.mrb[12].mxu0 }
 0x30e   : > { %v3486_v2 = vpop.f32.mrb[13].mxu0 }
 0x30f   : > { %v3487_v3 = vadd.f32 %v3486_v2, %v3485_v1 }
 0x311   : > { %v4691_v20 = vadd.f32 %v4690_v63, %v3487_v3 }
 0x32d   : > { %v3537_v6 = vpop.f32.mrb[14].mxu0 }
 0x32e   : > { %v3538_v9 = vpop.f32.mrb[15].mxu0 }
 0x32f   : > { %v3539_v0 = vadd.f32 %v3538_v9, %v3537_v6 }
 0x331   : > { %v4692_v11 = vadd.f32 %v4691_v20, %v3539_v0 }
 0x34d   : > { %v3589_v34 = vpop.f32.mrb[16].mxu0 }
 0x34e   : > { %v3590_v13 = vpop.f32.mrb[17].mxu0 }
 0x34f   : > { %v3591_v55 = vadd.f32 %v3590_v13, %v3589_v34 }
 0x351   : > { %v4693_v16 = vadd.f32 %v4692_v11, %v3591_v55 }
 0x36d   : > { %v3641_v7 = vpop.f32.mrb[18].mxu0 }
 0x36e   : > { %v3642_v23 = vpop.f32.mrb[19].mxu0 }
 0x36f   : > { %v3643_v18 = vadd.f32 %v3642_v23, %v3641_v7 }
 0x371   : > { %v4694_v19 = vadd.f32 %v4693_v16, %v3643_v18 }
 0x38d   : > { %v3693_v22 = vpop.f32.mrb[20].mxu0 }
 0x38e   : > { %v3694_v25 = vpop.f32.mrb[21].mxu0 }
 0x38f   : > { %v3695_v26 = vadd.f32 %v3694_v25, %v3693_v22 }
 0x391   : > { %v4695_v27 = vadd.f32 %v4694_v19, %v3695_v26 }
 0x3ad   : > { %v3745_v21 = vpop.f32.mrb[22].mxu0 }
 0x3ae   : > { %v3746_v28 = vpop.f32.mrb[23].mxu0 }
 0x3af   : > { %v3747_v29 = vadd.f32 %v3746_v28, %v3745_v21 }
 0x3b1   : > { %v4696_v10 = vadd.f32 %v4695_v27, %v3747_v29 }
 0x3b5   : > { %v2869_v30 = vpop.f32.mrb[8].mxu1 }
 0x3b6   : > { %v4697_v12 = vadd.f32 %v4696_v10, %v2869_v30  ;;  %v4128_v31 = vpop.f32.mrb[9].mxu1 }
 0x3b8   : > { %2874 = vst [vmem:[%s216_s10] sm:$0x1] %v4697_v12 }
 0x3b9   : > { %5047 = shalt.err (!%p5044_p3)
}
 0x3ba   : > { %s5048_s25 = scalar_lea.hbm %s6785_s14, 16  ;;  %s5052_s6 = scalar_lea.hbm %s6832_s5, 32 }
 0x3bb   : > { %p5049_p4 = scmp.ne.s32.totalorder %s6785_s14, %s5048_s25  ;;  %p5053_p9 = scmp.lt.u32.totalorder %s6785_s14, %s6832_s5 }
 0x3bc   : > { %p5054_p10 = scmp.lt.u32.totalorder %s5052_s6, %s5048_s25  ;;  %p5056_p12 = scmp.lt.u32.totalorder %s5048_s25, %s6785_s14 }
 0x3bd   : > { %p5050_p7 = pnand %p5049_p4, %p5179_p5 }
 0x3be   : > { %p5055_p11 = por %p5054_p10, %p5053_p9 }
 0x3bf   : > { %p5051_p8 = pneg %p5050_p7 }
 0x3c0   : > { %p5057_p13 = por %p5056_p12, %p5055_p11 }
 0x3c2   : > { %p5058_p0 = pnand %p5057_p13, %p5051_p8 }
 0x3c4   : > { %5061 = shalt.err (!%p5058_p0)
}
 0x3c5   : > { %4712 = dma.vmem_to_hbm [thread:$0]  (%p5179_p5), %s6787_s11, 16, %s6785_s14, %s2876_s15  }
 0x3c6 PF: > { %p4718_p1 = scmp.ge.s32.totalorder %s5096_s21, 2  ;;  %s2900_s9 = sand.u32 1, %s5084_s18  }
 0x3c7   : > { %s2901_s10 = scalar_lea.sflag [#allocation3], %s2900_s9 }
 0x3c8   : > { %p4715_p2 = pnand %p4718_p1, %p5183_p6 }
 0x3ca   : > { %5079 = dma.done.wait (!%p4715_p2), %s2901_s10, 16  }
 0x3cb   : > { %5081 = vsyncadd (!%p4715_p2), %s2901_s10, 4294967280  ;;  %p15_p3 = scmp.ge.s32.totalorder %s5166_s24, 4   ;;  %s6835_s18 = smov %s5088_s19 }
 0x3cc   : > { %s6836_s19 = smov %s5092_s20  ;;  %s6837_s20 = smov %s5177_s27 }
 0x3cd   : > { %s6838_s21 = smov %s5166_s24  ;;  %17 = sbr.rel (!%p15_p3) target bundleno = 3 (0x3), region = 85 }
 0x3d4   :  { %2905 = vsyncpa [#allocation3], 1 }
 0x3d5   :  { %2907 = vsyncpa [#allocation3 + $0x1], 1 }

</bundles_post_ra>
